<compile_context>
chip_gen: v7x
topology: tpu7x:2x2x1
jax: 0.10.0
libtpu: 0.0.40
codegen_flags: <defaults>
</compile_context>

<pallas_src>
import functools
import math

import jax
import jax.numpy as jnp
from jax.experimental import pallas as pl
from jax.experimental.pallas import tpu as pltpu

# ---- small, self-consistent config (matches module constructor semantics) ----
IMAGE_SIZE = 16
PATCH_SIZE = 8
NUM_LAYERS = 2
NUM_HEADS = 4
HIDDEN_DIM = 32
MLP_DIM = 64
NUM_CLASSES = 16
LN_EPS = 1e-6
SEQ_LEN = (IMAGE_SIZE // PATCH_SIZE) ** 2 + 1  # = 5 (class token + 4 patches)
SEQ_PAD = 8                                    # sublane-aligned padded sequence
CLS_PAD = 128                                  # lane-dense padded class dim
# dropout / attention_dropout default to 0.0 in the module -> identity, omitted.


# --------------------------- fused Pallas kernel ------------------------------

def _layernorm(v, g, b, eps):
    mu = jnp.mean(v, axis=-1, keepdims=True)
    var = jnp.mean((v - mu) ** 2, axis=-1, keepdims=True)
    return (v - mu) * jax.lax.rsqrt(var + eps) * g + b


def _vit_kernel(patch_ref, convw_ref, tok_ref, w_ref, v_ref, fin_ref, o_ref, *,
                batch_block, seq, seq_pad, num_heads, hidden, mlp_dim,
                num_layers, eps):
    """ViT forward for one batch block (all rows (8,128)-aligned)."""
    B, S, H, M, nh = batch_block, seq_pad, hidden, mlp_dim, num_heads
    hd = H // nh
    rows = B * S
    scale = 1.0 / math.sqrt(hd)

    # ---- patch embedding + [cls|pos|bias] slab (no in-kernel concatenates) ---
    patches = patch_ref[...].reshape(rows, -1)                     # (B*8, C*p*p)
    tok = jnp.dot(patches, convw_ref[...], preferred_element_type=jnp.float32)
    x = (tok.reshape(B, S, H) + tok_ref[...][None, :, :]).reshape(rows, H)

    # additive key mask hiding the padded sequence rows (cols >= seq)
    kidx = jax.lax.broadcasted_iota(jnp.int32, (1, 1, S), 2)
    kmask = jnp.where(kidx < seq, 0.0, -1e30).astype(jnp.float32)

    def split_heads(t):                       # (rows, H) -> (B*nh, S, hd)
        return t.reshape(B, S, nh, hd).transpose(0, 2, 1, 3).reshape(B * nh, S, hd)

    # ---- transformer encoder layers (statically unrolled, weights stacked) --
    for l in range(num_layers):
        wl = w_ref[l]                          # (H, 3H + H + M + M)
        vl = v_ref[l]                          # (8, 3H)
        wqkv, wo = wl[:, 0:3 * H], wl[:, 3 * H:4 * H]
        w1, w2t = wl[:, 4 * H:4 * H + M], wl[:, 4 * H + M:4 * H + 2 * M]
        ln1g, ln1b = vl[0:1, 0:H], vl[1:2, 0:H]
        bqkv, bo = vl[2:3, 0:3 * H], vl[3:4, 0:H]
        ln2g, ln2b = vl[4:5, 0:H], vl[5:6, 0:H]
        b1, b2 = vl[6:7, 0:M], vl[7:8, 0:H]

        # attention block (pre-LN), all heads in one batched contraction
        y = _layernorm(x, ln1g, ln1b, eps)
        qkv = jnp.dot(y, wqkv, preferred_element_type=jnp.float32) + bqkv
        qh = split_heads(qkv[:, 0:H] * scale)
        kh = split_heads(qkv[:, H:2 * H])
        vh = split_heads(qkv[:, 2 * H:3 * H])
        s = jnp.einsum('bqd,bkd->bqk', qh, kh,
                       preferred_element_type=jnp.float32) + kmask
        s = s - jnp.max(s, axis=-1, keepdims=True)   # keep ordering (mask safety)
        e = jnp.exp(s)
        p = e / jnp.sum(e, axis=-1, keepdims=True)   # exact division for parity
        ctx = jnp.einsum('bqk,bkd->bqd', p, vh,
                         preferred_element_type=jnp.float32)
        ctx = ctx.reshape(B, nh, S, hd).transpose(0, 2, 1, 3).reshape(rows, H)
        x = x + jnp.dot(ctx, wo, preferred_element_type=jnp.float32) + bo

        # MLP block (pre-LN, exact GELU)
        y2 = _layernorm(x, ln2g, ln2b, eps)
        h1 = jnp.dot(y2, w1, preferred_element_type=jnp.float32) + b1
        h1 = 0.5 * h1 * (1.0 + jax.lax.erf(h1 / math.sqrt(2.0)))
        x = x + jax.lax.dot_general(h1, w2t, (((1,), (1,)), ((), ())),
                                    preferred_element_type=jnp.float32) + b2

    # ---- final LayerNorm + head over every row; lane-dense (8,128) store ----
    fin = fin_ref[...]
    headw, lng = fin[0:H, :], fin[H:H + 1, 0:H]
    lnb, headb = fin[H + 1:H + 2, 0:H], fin[H + 2:H + 3, :]
    yf = _layernorm(x, lng, lnb, eps)
    logits = jnp.dot(yf, headw, preferred_element_type=jnp.float32) + headb
    o_ref[...] = logits.reshape(B, S, -1)


# ------------------------ parameters (deterministic) --------------------------

def init_params(key):
    keys = jax.random.split(key, 2 + NUM_LAYERS)
    H, M, L = HIDDEN_DIM, MLP_DIM, NUM_LAYERS
    params = {}
    fan_in = 3 * PATCH_SIZE * PATCH_SIZE
    params['conv_w'] = jax.random.normal(
        keys[0], (H, 3, PATCH_SIZE, PATCH_SIZE), jnp.float32) * math.sqrt(1.0 / fan_in)
    params['conv_b'] = jnp.zeros((1, H), jnp.float32)
    params['class_token'] = jnp.zeros((1, H), jnp.float32)
    params['pos_embedding'] = jax.random.normal(
        keys[1], (SEQ_LEN, H), jnp.float32) * 0.02

    def layer_params(k):
        lk = jax.random.split(k, 6)
        return {
            'ln1_g': jnp.ones((1, H), jnp.float32),
            'ln1_b': jnp.zeros((1, H), jnp.float32),
            'wqkv': jax.random.normal(lk[0], (H, 3 * H), jnp.float32) * math.sqrt(1.0 / H),
            'bqkv': jnp.zeros((1, 3 * H), jnp.float32),
            'wo': jax.random.normal(lk[1], (H, H), jnp.float32) * math.sqrt(1.0 / H),
            'bo': jnp.zeros((1, H), jnp.float32),
            'ln2_g': jnp.ones((1, H), jnp.float32),
            'ln2_b': jnp.zeros((1, H), jnp.float32),
            'w1': jax.random.normal(lk[2], (H, M), jnp.float32) * math.sqrt(2.0 / (H + M)),
            'b1': jax.random.normal(lk[3], (1, M), jnp.float32) * 1e-6,
            'w2': jax.random.normal(lk[4], (M, H), jnp.float32) * math.sqrt(2.0 / (H + M)),
            'b2': jax.random.normal(lk[5], (1, H), jnp.float32) * 1e-6,
        }

    layers = [layer_params(keys[2 + i]) for i in range(L)]
    params['layers'] = {name: jnp.stack([lp[name] for lp in layers], axis=0)
                        for name in layers[0]}
    params['ln_g'] = jnp.ones((1, H), jnp.float32)
    params['ln_b'] = jnp.zeros((1, H), jnp.float32)
    # head weight & bias are zero-initialized in the reference module
    params['head_w'] = jnp.zeros((H, NUM_CLASSES), jnp.float32)
    params['head_b'] = jnp.zeros((1, NUM_CLASSES), jnp.float32)
    return params


# ------------------------------ forward pass ----------------------------------

@jax.jit
def vit_forward(params, x):
    N, C, Hh, Ww = x.shape
    p = PATCH_SIZE
    nh_p, nw_p = Hh // p, Ww // p
    P = nh_p * nw_p
    S = P + 1
    H, M = HIDDEN_DIM, MLP_DIM
    cpp = C * p * p

    # im2col with one zero row per image at position 0 (class-token slot) and
    # zero padding up to SEQ_PAD rows -> aligned token offsets in the kernel.
    xp = (x.reshape(N, C, nh_p, p, nw_p, p)
           .transpose(0, 2, 4, 1, 3, 5)
           .reshape(N, P, cpp))
    patches = jnp.pad(xp, ((0, 0), (1, SEQ_PAD - 1 - P), (0, 0)))

    conv_w = params['conv_w'].reshape(H, -1).T                          # (cpp, H)

    # (8, H) token slab: row0 = cls + pos0, rows 1..P = conv_b + pos, rest = 0.
    tok_slab = jnp.concatenate(
        [params['class_token'] + params['pos_embedding'][0:1],
         params['conv_b'] + params['pos_embedding'][1:],
         jnp.zeros((SEQ_PAD - S, H), jnp.float32)], axis=0)

    # Pack per-layer params into two slabs (few large DMAs instead of 22 tiny ones).
    lp = params['layers']
    w_slab = jnp.concatenate(
        [lp['wqkv'], lp['wo'], lp['w1'], jnp.swapaxes(lp['w2'], 1, 2)], axis=2)
    vw = 3 * H

    def _padv(v):
        return jnp.pad(v, ((0, 0), (0, 0), (0, vw - v.shape[-1])))
    v_slab = jnp.concatenate(
        [_padv(lp['ln1_g']), _padv(lp['ln1_b']), _padv(lp['bqkv']), _padv(lp['bo']),
         _padv(lp['ln2_g']), _padv(lp['ln2_b']), _padv(lp['b1']), _padv(lp['b2'])],
        axis=1)                                                         # (L, 8, 3H)

    # Final LN + classification head slab, head padded lane-dense to 128.
    fin_slab = jnp.concatenate(
        [jnp.pad(params['head_w'], ((0, 0), (0, CLS_PAD - NUM_CLASSES))),
         jnp.pad(params['ln_g'], ((0, 0), (0, CLS_PAD - H))),
         jnp.pad(params['ln_b'], ((0, 0), (0, CLS_PAD - H))),
         jnp.pad(params['head_b'], ((0, 0), (0, CLS_PAD - NUM_CLASSES)))], axis=0)

    TB = 1                                 # one image per grid step
    grid = (pl.cdiv(N, TB),)               # "parallel" -> both TCs on v7x

    kernel = functools.partial(
        _vit_kernel, batch_block=TB, seq=S, seq_pad=SEQ_PAD,
        num_heads=NUM_HEADS, hidden=H, mlp_dim=M, num_layers=NUM_LAYERS,
        eps=LN_EPS)

    out = pl.pallas_call(
        kernel,
        out_shape=jax.ShapeDtypeStruct((N, SEQ_PAD, CLS_PAD), jnp.float32),
        grid=grid,
        in_specs=[
            pl.BlockSpec((TB, SEQ_PAD, cpp), lambda i: (i, 0, 0)),   # patches
            pl.BlockSpec(conv_w.shape, lambda i: (0, 0)),            # conv weight
            pl.BlockSpec(tok_slab.shape, lambda i: (0, 0)),          # cls/pos/bias slab
            pl.BlockSpec(w_slab.shape, lambda i: (0, 0, 0)),         # layer weights
            pl.BlockSpec(v_slab.shape, lambda i: (0, 0, 0)),         # layer vectors
            pl.BlockSpec(fin_slab.shape, lambda i: (0, 0)),          # final LN + head
        ],
        out_specs=pl.BlockSpec((TB, SEQ_PAD, CLS_PAD), lambda i: (i, 0, 0)),
        compiler_params=pltpu.CompilerParams(dimension_semantics=("parallel",)),
    )(patches, conv_w, tok_slab, w_slab, v_slab, fin_slab)

    # class-token (row 0) readout + un-pad the class dimension
    return out[:, 0, :NUM_CLASSES]


if __name__ == "__main__":
    key = jax.random.PRNGKey(0)
    pkey, xkey = jax.random.split(key)
    params = init_params(pkey)
    x = jax.random.normal(xkey, (2, 3, IMAGE_SIZE, IMAGE_SIZE), jnp.float32)
    out = vit_forward(params, x)
    jax.block_until_ready(out)
    assert out.shape == (2, NUM_CLASSES), out.shape
    assert bool(jnp.all(jnp.isfinite(out)))
    print("KERNEL_OK")
</pallas_src>

<mosaic_0001>
module attributes {stable_mosaic.version = 11 : i64} {
  func.func @_vit_kernel(%arg0: i32, %arg1: memref<1x8x192xf32, #tpu.memory_space<vmem>>, %arg2: memref<192x32xf32, #tpu.memory_space<vmem>>, %arg3: memref<8x32xf32, #tpu.memory_space<vmem>>, %arg4: memref<2x32x256xf32, #tpu.memory_space<vmem>>, %arg5: memref<2x8x96xf32, #tpu.memory_space<vmem>>, %arg6: memref<35x128xf32, #tpu.memory_space<vmem>>, %arg7: memref<1x8x128xf32, #tpu.memory_space<vmem>>) attributes {dimension_semantics = [#tpu.dimension_semantics<parallel>], iteration_bounds = array<i64: 2>, scalar_prefetch = 0 : i64, scratch_operands = 0 : i64, tpu.core_type = #tpu.core_type<tc>, window_params = [{transform_indices = @transform_0, window_bounds = array<i64: 1, 8, 192>}, {pipeline_mode = #tpu.pipeline_mode<synchronous>, transform_indices = @transform_1, window_bounds = array<i64: 192, 32>}, {pipeline_mode = #tpu.pipeline_mode<synchronous>, transform_indices = @transform_2, window_bounds = array<i64: 8, 32>}, {pipeline_mode = #tpu.pipeline_mode<synchronous>, transform_indices = @transform_3, window_bounds = array<i64: 2, 32, 256>}, {pipeline_mode = #tpu.pipeline_mode<synchronous>, transform_indices = @transform_4, window_bounds = array<i64: 2, 8, 96>}, {pipeline_mode = #tpu.pipeline_mode<synchronous>, transform_indices = @transform_5, window_bounds = array<i64: 35, 128>}, {transform_indices = @transform_6, window_bounds = array<i64: 1, 8, 128>}]} {
    %c0 = arith.constant 0 : index
    %c0_0 = arith.constant 0 : index
    %c0_1 = arith.constant 0 : index
    %0 = vector.load %arg1[%c0, %c0_0, %c0_1] : memref<1x8x192xf32, #tpu.memory_space<vmem>>, vector<1x8x192xf32>
    %1 = vector.shape_cast %0 : vector<1x8x192xf32> to vector<8x192xf32>
    %c0_2 = arith.constant 0 : index
    %c0_3 = arith.constant 0 : index
    %2 = vector.load %arg2[%c0_2, %c0_3] : memref<192x32xf32, #tpu.memory_space<vmem>>, vector<192x32xf32>
    %cst = arith.constant dense<0.000000e+00> : vector<8x32xf32>
    %3 = tpu.matmul %1, %2, %cst {dimension_numbers = #tpu.dot_dimension_numbers<[1], [0], [0], [1], [0, 0, 1, 1], [], []>} : vector<8x192xf32>, vector<192x32xf32>, vector<8x32xf32> -> vector<8x32xf32>
    %4 = vector.shape_cast %3 : vector<8x32xf32> to vector<1x8x32xf32>
    %c0_4 = arith.constant 0 : index
    %c0_5 = arith.constant 0 : index
    %5 = vector.load %arg3[%c0_4, %c0_5] : memref<8x32xf32, #tpu.memory_space<vmem>>, vector<8x32xf32>
    %6 = vector.shape_cast %5 : vector<8x32xf32> to vector<1x8x32xf32>
    %7 = arith.addf %4, %6 : vector<1x8x32xf32>
    %8 = vector.shape_cast %7 : vector<1x8x32xf32> to vector<8x32xf32>
    %9 = tpu.iota {dimensions = array<i32: 2>} : vector<1x1x8xi32>
    %c5_i32 = arith.constant 5 : i32
    %10 = vector.broadcast %c5_i32 : i32 to vector<1x1x8xi32>
    %11 = arith.cmpi slt, %9, %10 : vector<1x1x8xi32>
    %cst_6 = arith.constant 0.000000e+00 : f32
    %cst_7 = arith.constant -1.000000e+30 : f32
    %12 = vector.broadcast %cst_6 : f32 to vector<1x1x8xf32>
    %13 = vector.broadcast %cst_7 : f32 to vector<1x1x8xf32>
    %14 = arith.select %11, %12, %13 : vector<1x1x8xi1>, vector<1x1x8xf32>
    %c0_8 = arith.constant 0 : index
    %c0_9 = arith.constant 0 : index
    %c0_10 = arith.constant 0 : index
    %15 = vector.load %arg4[%c0_8, %c0_9, %c0_10] : memref<2x32x256xf32, #tpu.memory_space<vmem>>, vector<1x32x256xf32>
    %16 = vector.shape_cast %15 : vector<1x32x256xf32> to vector<32x256xf32>
    %c0_11 = arith.constant 0 : index
    %c0_12 = arith.constant 0 : index
    %c0_13 = arith.constant 0 : index
    %17 = vector.load %arg5[%c0_11, %c0_12, %c0_13] : memref<2x8x96xf32, #tpu.memory_space<vmem>>, vector<1x8x96xf32>
    %18 = vector.shape_cast %17 : vector<1x8x96xf32> to vector<8x96xf32>
    %19 = vector.extract_strided_slice %16 {offsets = [0, 0], sizes = [32, 96], strides = [1, 1]} : vector<32x256xf32> to vector<32x96xf32>
    %20 = vector.extract_strided_slice %16 {offsets = [0, 96], sizes = [32, 32], strides = [1, 1]} : vector<32x256xf32> to vector<32x32xf32>
    %21 = vector.extract_strided_slice %16 {offsets = [0, 128], sizes = [32, 64], strides = [1, 1]} : vector<32x256xf32> to vector<32x64xf32>
    %22 = vector.extract_strided_slice %16 {offsets = [0, 192], sizes = [32, 64], strides = [1, 1]} : vector<32x256xf32> to vector<32x64xf32>
    %23 = vector.extract_strided_slice %18 {offsets = [0, 0], sizes = [1, 32], strides = [1, 1]} : vector<8x96xf32> to vector<1x32xf32>
    %24 = vector.extract_strided_slice %18 {offsets = [1, 0], sizes = [1, 32], strides = [1, 1]} : vector<8x96xf32> to vector<1x32xf32>
    %25 = vector.extract_strided_slice %18 {offsets = [2, 0], sizes = [1, 96], strides = [1, 1]} : vector<8x96xf32> to vector<1x96xf32>
    %26 = vector.extract_strided_slice %18 {offsets = [3, 0], sizes = [1, 32], strides = [1, 1]} : vector<8x96xf32> to vector<1x32xf32>
    %27 = vector.extract_strided_slice %18 {offsets = [4, 0], sizes = [1, 32], strides = [1, 1]} : vector<8x96xf32> to vector<1x32xf32>
    %28 = vector.extract_strided_slice %18 {offsets = [5, 0], sizes = [1, 32], strides = [1, 1]} : vector<8x96xf32> to vector<1x32xf32>
    %29 = vector.extract_strided_slice %18 {offsets = [6, 0], sizes = [1, 64], strides = [1, 1]} : vector<8x96xf32> to vector<1x64xf32>
    %30 = vector.extract_strided_slice %18 {offsets = [7, 0], sizes = [1, 32], strides = [1, 1]} : vector<8x96xf32> to vector<1x32xf32>
    %cst_14 = arith.constant dense<0.000000e+00> : vector<8xf32>
    %31 = vector.multi_reduction <add>, %8, %cst_14 [1] : vector<8x32xf32> to vector<8xf32>
    %32 = vector.shape_cast %31 : vector<8xf32> to vector<8x1xf32>
    %cst_15 = arith.constant 3.200000e+01 : f32
    %33 = vector.broadcast %cst_15 : f32 to vector<8x1xf32>
    %34 = arith.divf %32, %33 : vector<8x1xf32>
    %35 = vector.broadcast %34 : vector<8x1xf32> to vector<8x32xf32>
    %36 = arith.subf %8, %35 : vector<8x32xf32>
    %37 = arith.mulf %36, %36 : vector<8x32xf32>
    %cst_16 = arith.constant dense<0.000000e+00> : vector<8xf32>
    %38 = vector.multi_reduction <add>, %37, %cst_16 [1] : vector<8x32xf32> to vector<8xf32>
    %39 = vector.shape_cast %38 : vector<8xf32> to vector<8x1xf32>
    %cst_17 = arith.constant 3.200000e+01 : f32
    %40 = vector.broadcast %cst_17 : f32 to vector<8x1xf32>
    %41 = arith.divf %39, %40 : vector<8x1xf32>
    %42 = vector.broadcast %34 : vector<8x1xf32> to vector<8x32xf32>
    %43 = arith.subf %8, %42 : vector<8x32xf32>
    %cst_18 = arith.constant 9.99999997E-7 : f32
    %44 = vector.broadcast %cst_18 : f32 to vector<8x1xf32>
    %45 = arith.addf %41, %44 : vector<8x1xf32>
    %46 = math.rsqrt %45 : vector<8x1xf32>
    %47 = vector.broadcast %46 : vector<8x1xf32> to vector<8x32xf32>
    %48 = arith.mulf %43, %47 : vector<8x32xf32>
    %49 = vector.broadcast %23 : vector<1x32xf32> to vector<8x32xf32>
    %50 = arith.mulf %48, %49 : vector<8x32xf32>
    %51 = vector.broadcast %24 : vector<1x32xf32> to vector<8x32xf32>
    %52 = arith.addf %50, %51 : vector<8x32xf32>
    %cst_19 = arith.constant dense<0.000000e+00> : vector<8x96xf32>
    %53 = tpu.matmul %52, %19, %cst_19 {dimension_numbers = #tpu.dot_dimension_numbers<[1], [0], [0], [1], [0, 0, 1, 1], [], []>} : vector<8x32xf32>, vector<32x96xf32>, vector<8x96xf32> -> vector<8x96xf32>
    %54 = vector.broadcast %25 : vector<1x96xf32> to vector<8x96xf32>
    %55 = arith.addf %53, %54 : vector<8x96xf32>
    %56 = vector.extract_strided_slice %55 {offsets = [0, 0], sizes = [8, 32], strides = [1, 1]} : vector<8x96xf32> to vector<8x32xf32>
    %cst_20 = arith.constant 0.353553385 : f32
    %57 = vector.broadcast %cst_20 : f32 to vector<8x32xf32>
    %58 = arith.mulf %56, %57 : vector<8x32xf32>
    %59 = vector.shape_cast %58 : vector<8x32xf32> to vector<1x8x4x8xf32>
    %60 = tpu.transpose %59, [0, 2, 1, 3] : vector<1x8x4x8xf32> -> vector<1x4x8x8xf32>
    %61 = vector.shape_cast %60 : vector<1x4x8x8xf32> to vector<4x8x8xf32>
    %62 = vector.extract_strided_slice %55 {offsets = [0, 32], sizes = [8, 32], strides = [1, 1]} : vector<8x96xf32> to vector<8x32xf32>
    %63 = vector.shape_cast %62 : vector<8x32xf32> to vector<1x8x4x8xf32>
    %64 = tpu.transpose %63, [0, 2, 1, 3] : vector<1x8x4x8xf32> -> vector<1x4x8x8xf32>
    %65 = vector.shape_cast %64 : vector<1x4x8x8xf32> to vector<4x8x8xf32>
    %66 = vector.extract_strided_slice %55 {offsets = [0, 64], sizes = [8, 32], strides = [1, 1]} : vector<8x96xf32> to vector<8x32xf32>
    %67 = vector.shape_cast %66 : vector<8x32xf32> to vector<1x8x4x8xf32>
    %68 = tpu.transpose %67, [0, 2, 1, 3] : vector<1x8x4x8xf32> -> vector<1x4x8x8xf32>
    %69 = vector.shape_cast %68 : vector<1x4x8x8xf32> to vector<4x8x8xf32>
    "tpu.trace_start"() <{level = 10 : i32, message = "bqd,bkd->bqk"}> : () -> ()
    %cst_21 = arith.constant dense<0.000000e+00> : vector<4x8x8xf32>
    %70 = tpu.matmul %61, %65, %cst_21 {dimension_numbers = #tpu.dot_dimension_numbers<[2], [2], [1], [1], [0, 0, 0, 1, 1, 1], [0], [0]>} : vector<4x8x8xf32>, vector<4x8x8xf32>, vector<4x8x8xf32> -> vector<4x8x8xf32>
    "tpu.trace_stop"() : () -> ()
    %71 = vector.broadcast %14 : vector<1x1x8xf32> to vector<4x8x8xf32>
    %72 = arith.addf %70, %71 : vector<4x8x8xf32>
    %cst_22 = arith.constant dense<0xFF800000> : vector<4x8xf32>
    %73 = vector.multi_reduction <maximumf>, %72, %cst_22 [2] : vector<4x8x8xf32> to vector<4x8xf32>
    %74 = vector.shape_cast %73 : vector<4x8xf32> to vector<4x8x1xf32>
    %75 = vector.broadcast %74 : vector<4x8x1xf32> to vector<4x8x8xf32>
    %76 = arith.subf %72, %75 : vector<4x8x8xf32>
    %77 = math.exp %76 : vector<4x8x8xf32>
    %cst_23 = arith.constant dense<0.000000e+00> : vector<4x8xf32>
    %78 = vector.multi_reduction <add>, %77, %cst_23 [2] : vector<4x8x8xf32> to vector<4x8xf32>
    %79 = vector.shape_cast %78 : vector<4x8xf32> to vector<4x8x1xf32>
    %80 = vector.broadcast %79 : vector<4x8x1xf32> to vector<4x8x8xf32>
    %81 = arith.divf %77, %80 : vector<4x8x8xf32>
    "tpu.trace_start"() <{level = 10 : i32, message = "bqk,bkd->bqd"}> : () -> ()
    %cst_24 = arith.constant dense<0.000000e+00> : vector<4x8x8xf32>
    %82 = tpu.matmul %81, %69, %cst_24 {dimension_numbers = #tpu.dot_dimension_numbers<[2], [1], [1], [2], [0, 0, 0, 1, 1, 2], [0], [0]>} : vector<4x8x8xf32>, vector<4x8x8xf32>, vector<4x8x8xf32> -> vector<4x8x8xf32>
    "tpu.trace_stop"() : () -> ()
    %83 = vector.shape_cast %82 : vector<4x8x8xf32> to vector<1x4x8x8xf32>
    %84 = tpu.transpose %83, [0, 2, 1, 3] : vector<1x4x8x8xf32> -> vector<1x8x4x8xf32>
    %85 = vector.shape_cast %84 : vector<1x8x4x8xf32> to vector<8x32xf32>
    %cst_25 = arith.constant dense<0.000000e+00> : vector<8x32xf32>
    %86 = tpu.matmul %85, %20, %cst_25 {dimension_numbers = #tpu.dot_dimension_numbers<[1], [0], [0], [1], [0, 0, 1, 1], [], []>} : vector<8x32xf32>, vector<32x32xf32>, vector<8x32xf32> -> vector<8x32xf32>
    %87 = arith.addf %8, %86 : vector<8x32xf32>
    %88 = vector.broadcast %26 : vector<1x32xf32> to vector<8x32xf32>
    %89 = arith.addf %87, %88 : vector<8x32xf32>
    %cst_26 = arith.constant dense<0.000000e+00> : vector<8xf32>
    %90 = vector.multi_reduction <add>, %89, %cst_26 [1] : vector<8x32xf32> to vector<8xf32>
    %91 = vector.shape_cast %90 : vector<8xf32> to vector<8x1xf32>
    %cst_27 = arith.constant 3.200000e+01 : f32
    %92 = vector.broadcast %cst_27 : f32 to vector<8x1xf32>
    %93 = arith.divf %91, %92 : vector<8x1xf32>
    %94 = vector.broadcast %93 : vector<8x1xf32> to vector<8x32xf32>
    %95 = arith.subf %89, %94 : vector<8x32xf32>
    %96 = arith.mulf %95, %95 : vector<8x32xf32>
    %cst_28 = arith.constant dense<0.000000e+00> : vector<8xf32>
    %97 = vector.multi_reduction <add>, %96, %cst_28 [1] : vector<8x32xf32> to vector<8xf32>
    %98 = vector.shape_cast %97 : vector<8xf32> to vector<8x1xf32>
    %cst_29 = arith.constant 3.200000e+01 : f32
    %99 = vector.broadcast %cst_29 : f32 to vector<8x1xf32>
    %100 = arith.divf %98, %99 : vector<8x1xf32>
    %101 = vector.broadcast %93 : vector<8x1xf32> to vector<8x32xf32>
    %102 = arith.subf %89, %101 : vector<8x32xf32>
    %cst_30 = arith.constant 9.99999997E-7 : f32
    %103 = vector.broadcast %cst_30 : f32 to vector<8x1xf32>
    %104 = arith.addf %100, %103 : vector<8x1xf32>
    %105 = math.rsqrt %104 : vector<8x1xf32>
    %106 = vector.broadcast %105 : vector<8x1xf32> to vector<8x32xf32>
    %107 = arith.mulf %102, %106 : vector<8x32xf32>
    %108 = vector.broadcast %27 : vector<1x32xf32> to vector<8x32xf32>
    %109 = arith.mulf %107, %108 : vector<8x32xf32>
    %110 = vector.broadcast %28 : vector<1x32xf32> to vector<8x32xf32>
    %111 = arith.addf %109, %110 : vector<8x32xf32>
    %cst_31 = arith.constant dense<0.000000e+00> : vector<8x64xf32>
    %112 = tpu.matmul %111, %21, %cst_31 {dimension_numbers = #tpu.dot_dimension_numbers<[1], [0], [0], [1], [0, 0, 1, 1], [], []>} : vector<8x32xf32>, vector<32x64xf32>, vector<8x64xf32> -> vector<8x64xf32>
    %113 = vector.broadcast %29 : vector<1x64xf32> to vector<8x64xf32>
    %114 = arith.addf %112, %113 : vector<8x64xf32>
    %cst_32 = arith.constant 5.000000e-01 : f32
    %115 = vector.broadcast %cst_32 : f32 to vector<8x64xf32>
    %116 = arith.mulf %115, %114 : vector<8x64xf32>
    %cst_33 = arith.constant 1.41421354 : f32
    %117 = vector.broadcast %cst_33 : f32 to vector<8x64xf32>
    %118 = arith.divf %114, %117 : vector<8x64xf32>
    %119 = math.erf %118 : vector<8x64xf32>
    %cst_34 = arith.constant 1.000000e+00 : f32
    %120 = vector.broadcast %cst_34 : f32 to vector<8x64xf32>
    %121 = arith.addf %120, %119 : vector<8x64xf32>
    %122 = arith.mulf %116, %121 : vector<8x64xf32>
    %cst_35 = arith.constant dense<0.000000e+00> : vector<8x32xf32>
    %123 = tpu.matmul %122, %22, %cst_35 {dimension_numbers = #tpu.dot_dimension_numbers<[1], [1], [0], [0], [0, 0, 1, 0], [], []>} : vector<8x64xf32>, vector<32x64xf32>, vector<8x32xf32> -> vector<8x32xf32>
    %124 = arith.addf %89, %123 : vector<8x32xf32>
    %125 = vector.broadcast %30 : vector<1x32xf32> to vector<8x32xf32>
    %126 = arith.addf %124, %125 : vector<8x32xf32>
    %c1 = arith.constant 1 : index
    %c0_36 = arith.constant 0 : index
    %c0_37 = arith.constant 0 : index
    %127 = vector.load %arg4[%c1, %c0_36, %c0_37] : memref<2x32x256xf32, #tpu.memory_space<vmem>>, vector<1x32x256xf32>
    %128 = vector.shape_cast %127 : vector<1x32x256xf32> to vector<32x256xf32>
    %c1_38 = arith.constant 1 : index
    %c0_39 = arith.constant 0 : index
    %c0_40 = arith.constant 0 : index
    %129 = vector.load %arg5[%c1_38, %c0_39, %c0_40] : memref<2x8x96xf32, #tpu.memory_space<vmem>>, vector<1x8x96xf32>
    %130 = vector.shape_cast %129 : vector<1x8x96xf32> to vector<8x96xf32>
    %131 = vector.extract_strided_slice %128 {offsets = [0, 0], sizes = [32, 96], strides = [1, 1]} : vector<32x256xf32> to vector<32x96xf32>
    %132 = vector.extract_strided_slice %128 {offsets = [0, 96], sizes = [32, 32], strides = [1, 1]} : vector<32x256xf32> to vector<32x32xf32>
    %133 = vector.extract_strided_slice %128 {offsets = [0, 128], sizes = [32, 64], strides = [1, 1]} : vector<32x256xf32> to vector<32x64xf32>
    %134 = vector.extract_strided_slice %128 {offsets = [0, 192], sizes = [32, 64], strides = [1, 1]} : vector<32x256xf32> to vector<32x64xf32>
    %135 = vector.extract_strided_slice %130 {offsets = [0, 0], sizes = [1, 32], strides = [1, 1]} : vector<8x96xf32> to vector<1x32xf32>
    %136 = vector.extract_strided_slice %130 {offsets = [1, 0], sizes = [1, 32], strides = [1, 1]} : vector<8x96xf32> to vector<1x32xf32>
    %137 = vector.extract_strided_slice %130 {offsets = [2, 0], sizes = [1, 96], strides = [1, 1]} : vector<8x96xf32> to vector<1x96xf32>
    %138 = vector.extract_strided_slice %130 {offsets = [3, 0], sizes = [1, 32], strides = [1, 1]} : vector<8x96xf32> to vector<1x32xf32>
    %139 = vector.extract_strided_slice %130 {offsets = [4, 0], sizes = [1, 32], strides = [1, 1]} : vector<8x96xf32> to vector<1x32xf32>
    %140 = vector.extract_strided_slice %130 {offsets = [5, 0], sizes = [1, 32], strides = [1, 1]} : vector<8x96xf32> to vector<1x32xf32>
    %141 = vector.extract_strided_slice %130 {offsets = [6, 0], sizes = [1, 64], strides = [1, 1]} : vector<8x96xf32> to vector<1x64xf32>
    %142 = vector.extract_strided_slice %130 {offsets = [7, 0], sizes = [1, 32], strides = [1, 1]} : vector<8x96xf32> to vector<1x32xf32>
    %cst_41 = arith.constant dense<0.000000e+00> : vector<8xf32>
    %143 = vector.multi_reduction <add>, %126, %cst_41 [1] : vector<8x32xf32> to vector<8xf32>
    %144 = vector.shape_cast %143 : vector<8xf32> to vector<8x1xf32>
    %cst_42 = arith.constant 3.200000e+01 : f32
    %145 = vector.broadcast %cst_42 : f32 to vector<8x1xf32>
    %146 = arith.divf %144, %145 : vector<8x1xf32>
    %147 = vector.broadcast %146 : vector<8x1xf32> to vector<8x32xf32>
    %148 = arith.subf %126, %147 : vector<8x32xf32>
    %149 = arith.mulf %148, %148 : vector<8x32xf32>
    %cst_43 = arith.constant dense<0.000000e+00> : vector<8xf32>
    %150 = vector.multi_reduction <add>, %149, %cst_43 [1] : vector<8x32xf32> to vector<8xf32>
    %151 = vector.shape_cast %150 : vector<8xf32> to vector<8x1xf32>
    %cst_44 = arith.constant 3.200000e+01 : f32
    %152 = vector.broadcast %cst_44 : f32 to vector<8x1xf32>
    %153 = arith.divf %151, %152 : vector<8x1xf32>
    %154 = vector.broadcast %146 : vector<8x1xf32> to vector<8x32xf32>
    %155 = arith.subf %126, %154 : vector<8x32xf32>
    %cst_45 = arith.constant 9.99999997E-7 : f32
    %156 = vector.broadcast %cst_45 : f32 to vector<8x1xf32>
    %157 = arith.addf %153, %156 : vector<8x1xf32>
    %158 = math.rsqrt %157 : vector<8x1xf32>
    %159 = vector.broadcast %158 : vector<8x1xf32> to vector<8x32xf32>
    %160 = arith.mulf %155, %159 : vector<8x32xf32>
    %161 = vector.broadcast %135 : vector<1x32xf32> to vector<8x32xf32>
    %162 = arith.mulf %160, %161 : vector<8x32xf32>
    %163 = vector.broadcast %136 : vector<1x32xf32> to vector<8x32xf32>
    %164 = arith.addf %162, %163 : vector<8x32xf32>
    %cst_46 = arith.constant dense<0.000000e+00> : vector<8x96xf32>
    %165 = tpu.matmul %164, %131, %cst_46 {dimension_numbers = #tpu.dot_dimension_numbers<[1], [0], [0], [1], [0, 0, 1, 1], [], []>} : vector<8x32xf32>, vector<32x96xf32>, vector<8x96xf32> -> vector<8x96xf32>
    %166 = vector.broadcast %137 : vector<1x96xf32> to vector<8x96xf32>
    %167 = arith.addf %165, %166 : vector<8x96xf32>
    %168 = vector.extract_strided_slice %167 {offsets = [0, 0], sizes = [8, 32], strides = [1, 1]} : vector<8x96xf32> to vector<8x32xf32>
    %cst_47 = arith.constant 0.353553385 : f32
    %169 = vector.broadcast %cst_47 : f32 to vector<8x32xf32>
    %170 = arith.mulf %168, %169 : vector<8x32xf32>
    %171 = vector.shape_cast %170 : vector<8x32xf32> to vector<1x8x4x8xf32>
    %172 = tpu.transpose %171, [0, 2, 1, 3] : vector<1x8x4x8xf32> -> vector<1x4x8x8xf32>
    %173 = vector.shape_cast %172 : vector<1x4x8x8xf32> to vector<4x8x8xf32>
    %174 = vector.extract_strided_slice %167 {offsets = [0, 32], sizes = [8, 32], strides = [1, 1]} : vector<8x96xf32> to vector<8x32xf32>
    %175 = vector.shape_cast %174 : vector<8x32xf32> to vector<1x8x4x8xf32>
    %176 = tpu.transpose %175, [0, 2, 1, 3] : vector<1x8x4x8xf32> -> vector<1x4x8x8xf32>
    %177 = vector.shape_cast %176 : vector<1x4x8x8xf32> to vector<4x8x8xf32>
    %178 = vector.extract_strided_slice %167 {offsets = [0, 64], sizes = [8, 32], strides = [1, 1]} : vector<8x96xf32> to vector<8x32xf32>
    %179 = vector.shape_cast %178 : vector<8x32xf32> to vector<1x8x4x8xf32>
    %180 = tpu.transpose %179, [0, 2, 1, 3] : vector<1x8x4x8xf32> -> vector<1x4x8x8xf32>
    %181 = vector.shape_cast %180 : vector<1x4x8x8xf32> to vector<4x8x8xf32>
    "tpu.trace_start"() <{level = 10 : i32, message = "bqd,bkd->bqk"}> : () -> ()
    %cst_48 = arith.constant dense<0.000000e+00> : vector<4x8x8xf32>
    %182 = tpu.matmul %173, %177, %cst_48 {dimension_numbers = #tpu.dot_dimension_numbers<[2], [2], [1], [1], [0, 0, 0, 1, 1, 1], [0], [0]>} : vector<4x8x8xf32>, vector<4x8x8xf32>, vector<4x8x8xf32> -> vector<4x8x8xf32>
    "tpu.trace_stop"() : () -> ()
    %183 = vector.broadcast %14 : vector<1x1x8xf32> to vector<4x8x8xf32>
    %184 = arith.addf %182, %183 : vector<4x8x8xf32>
    %cst_49 = arith.constant dense<0xFF800000> : vector<4x8xf32>
    %185 = vector.multi_reduction <maximumf>, %184, %cst_49 [2] : vector<4x8x8xf32> to vector<4x8xf32>
    %186 = vector.shape_cast %185 : vector<4x8xf32> to vector<4x8x1xf32>
    %187 = vector.broadcast %186 : vector<4x8x1xf32> to vector<4x8x8xf32>
    %188 = arith.subf %184, %187 : vector<4x8x8xf32>
    %189 = math.exp %188 : vector<4x8x8xf32>
    %cst_50 = arith.constant dense<0.000000e+00> : vector<4x8xf32>
    %190 = vector.multi_reduction <add>, %189, %cst_50 [2] : vector<4x8x8xf32> to vector<4x8xf32>
    %191 = vector.shape_cast %190 : vector<4x8xf32> to vector<4x8x1xf32>
    %192 = vector.broadcast %191 : vector<4x8x1xf32> to vector<4x8x8xf32>
    %193 = arith.divf %189, %192 : vector<4x8x8xf32>
    "tpu.trace_start"() <{level = 10 : i32, message = "bqk,bkd->bqd"}> : () -> ()
    %cst_51 = arith.constant dense<0.000000e+00> : vector<4x8x8xf32>
    %194 = tpu.matmul %193, %181, %cst_51 {dimension_numbers = #tpu.dot_dimension_numbers<[2], [1], [1], [2], [0, 0, 0, 1, 1, 2], [0], [0]>} : vector<4x8x8xf32>, vector<4x8x8xf32>, vector<4x8x8xf32> -> vector<4x8x8xf32>
    "tpu.trace_stop"() : () -> ()
    %195 = vector.shape_cast %194 : vector<4x8x8xf32> to vector<1x4x8x8xf32>
    %196 = tpu.transpose %195, [0, 2, 1, 3] : vector<1x4x8x8xf32> -> vector<1x8x4x8xf32>
    %197 = vector.shape_cast %196 : vector<1x8x4x8xf32> to vector<8x32xf32>
    %cst_52 = arith.constant dense<0.000000e+00> : vector<8x32xf32>
    %198 = tpu.matmul %197, %132, %cst_52 {dimension_numbers = #tpu.dot_dimension_numbers<[1], [0], [0], [1], [0, 0, 1, 1], [], []>} : vector<8x32xf32>, vector<32x32xf32>, vector<8x32xf32> -> vector<8x32xf32>
    %199 = arith.addf %126, %198 : vector<8x32xf32>
    %200 = vector.broadcast %138 : vector<1x32xf32> to vector<8x32xf32>
    %201 = arith.addf %199, %200 : vector<8x32xf32>
    %cst_53 = arith.constant dense<0.000000e+00> : vector<8xf32>
    %202 = vector.multi_reduction <add>, %201, %cst_53 [1] : vector<8x32xf32> to vector<8xf32>
    %203 = vector.shape_cast %202 : vector<8xf32> to vector<8x1xf32>
    %cst_54 = arith.constant 3.200000e+01 : f32
    %204 = vector.broadcast %cst_54 : f32 to vector<8x1xf32>
    %205 = arith.divf %203, %204 : vector<8x1xf32>
    %206 = vector.broadcast %205 : vector<8x1xf32> to vector<8x32xf32>
    %207 = arith.subf %201, %206 : vector<8x32xf32>
    %208 = arith.mulf %207, %207 : vector<8x32xf32>
    %cst_55 = arith.constant dense<0.000000e+00> : vector<8xf32>
    %209 = vector.multi_reduction <add>, %208, %cst_55 [1] : vector<8x32xf32> to vector<8xf32>
    %210 = vector.shape_cast %209 : vector<8xf32> to vector<8x1xf32>
    %cst_56 = arith.constant 3.200000e+01 : f32
    %211 = vector.broadcast %cst_56 : f32 to vector<8x1xf32>
    %212 = arith.divf %210, %211 : vector<8x1xf32>
    %213 = vector.broadcast %205 : vector<8x1xf32> to vector<8x32xf32>
    %214 = arith.subf %201, %213 : vector<8x32xf32>
    %cst_57 = arith.constant 9.99999997E-7 : f32
    %215 = vector.broadcast %cst_57 : f32 to vector<8x1xf32>
    %216 = arith.addf %212, %215 : vector<8x1xf32>
    %217 = math.rsqrt %216 : vector<8x1xf32>
    %218 = vector.broadcast %217 : vector<8x1xf32> to vector<8x32xf32>
    %219 = arith.mulf %214, %218 : vector<8x32xf32>
    %220 = vector.broadcast %139 : vector<1x32xf32> to vector<8x32xf32>
    %221 = arith.mulf %219, %220 : vector<8x32xf32>
    %222 = vector.broadcast %140 : vector<1x32xf32> to vector<8x32xf32>
    %223 = arith.addf %221, %222 : vector<8x32xf32>
    %cst_58 = arith.constant dense<0.000000e+00> : vector<8x64xf32>
    %224 = tpu.matmul %223, %133, %cst_58 {dimension_numbers = #tpu.dot_dimension_numbers<[1], [0], [0], [1], [0, 0, 1, 1], [], []>} : vector<8x32xf32>, vector<32x64xf32>, vector<8x64xf32> -> vector<8x64xf32>
    %225 = vector.broadcast %141 : vector<1x64xf32> to vector<8x64xf32>
    %226 = arith.addf %224, %225 : vector<8x64xf32>
    %cst_59 = arith.constant 5.000000e-01 : f32
    %227 = vector.broadcast %cst_59 : f32 to vector<8x64xf32>
    %228 = arith.mulf %227, %226 : vector<8x64xf32>
    %cst_60 = arith.constant 1.41421354 : f32
    %229 = vector.broadcast %cst_60 : f32 to vector<8x64xf32>
    %230 = arith.divf %226, %229 : vector<8x64xf32>
    %231 = math.erf %230 : vector<8x64xf32>
    %cst_61 = arith.constant 1.000000e+00 : f32
    %232 = vector.broadcast %cst_61 : f32 to vector<8x64xf32>
    %233 = arith.addf %232, %231 : vector<8x64xf32>
    %234 = arith.mulf %228, %233 : vector<8x64xf32>
    %cst_62 = arith.constant dense<0.000000e+00> : vector<8x32xf32>
    %235 = tpu.matmul %234, %134, %cst_62 {dimension_numbers = #tpu.dot_dimension_numbers<[1], [1], [0], [0], [0, 0, 1, 0], [], []>} : vector<8x64xf32>, vector<32x64xf32>, vector<8x32xf32> -> vector<8x32xf32>
    %236 = arith.addf %201, %235 : vector<8x32xf32>
    %237 = vector.broadcast %142 : vector<1x32xf32> to vector<8x32xf32>
    %238 = arith.addf %236, %237 : vector<8x32xf32>
    %c0_63 = arith.constant 0 : index
    %c0_64 = arith.constant 0 : index
    %239 = vector.load %arg6[%c0_63, %c0_64] : memref<35x128xf32, #tpu.memory_space<vmem>>, vector<35x128xf32>
    %240 = vector.extract_strided_slice %239 {offsets = [0, 0], sizes = [32, 128], strides = [1, 1]} : vector<35x128xf32> to vector<32x128xf32>
    %241 = vector.extract_strided_slice %239 {offsets = [32, 0], sizes = [1, 32], strides = [1, 1]} : vector<35x128xf32> to vector<1x32xf32>
    %242 = vector.extract_strided_slice %239 {offsets = [33, 0], sizes = [1, 32], strides = [1, 1]} : vector<35x128xf32> to vector<1x32xf32>
    %243 = vector.extract_strided_slice %239 {offsets = [34, 0], sizes = [1, 128], strides = [1, 1]} : vector<35x128xf32> to vector<1x128xf32>
    %cst_65 = arith.constant dense<0.000000e+00> : vector<8xf32>
    %244 = vector.multi_reduction <add>, %238, %cst_65 [1] : vector<8x32xf32> to vector<8xf32>
    %245 = vector.shape_cast %244 : vector<8xf32> to vector<8x1xf32>
    %cst_66 = arith.constant 3.200000e+01 : f32
    %246 = vector.broadcast %cst_66 : f32 to vector<8x1xf32>
    %247 = arith.divf %245, %246 : vector<8x1xf32>
    %248 = vector.broadcast %247 : vector<8x1xf32> to vector<8x32xf32>
    %249 = arith.subf %238, %248 : vector<8x32xf32>
    %250 = arith.mulf %249, %249 : vector<8x32xf32>
    %cst_67 = arith.constant dense<0.000000e+00> : vector<8xf32>
    %251 = vector.multi_reduction <add>, %250, %cst_67 [1] : vector<8x32xf32> to vector<8xf32>
    %252 = vector.shape_cast %251 : vector<8xf32> to vector<8x1xf32>
    %cst_68 = arith.constant 3.200000e+01 : f32
    %253 = vector.broadcast %cst_68 : f32 to vector<8x1xf32>
    %254 = arith.divf %252, %253 : vector<8x1xf32>
    %255 = vector.broadcast %247 : vector<8x1xf32> to vector<8x32xf32>
    %256 = arith.subf %238, %255 : vector<8x32xf32>
    %cst_69 = arith.constant 9.99999997E-7 : f32
    %257 = vector.broadcast %cst_69 : f32 to vector<8x1xf32>
    %258 = arith.addf %254, %257 : vector<8x1xf32>
    %259 = math.rsqrt %258 : vector<8x1xf32>
    %260 = vector.broadcast %259 : vector<8x1xf32> to vector<8x32xf32>
    %261 = arith.mulf %256, %260 : vector<8x32xf32>
    %262 = vector.broadcast %241 : vector<1x32xf32> to vector<8x32xf32>
    %263 = arith.mulf %261, %262 : vector<8x32xf32>
    %264 = vector.broadcast %242 : vector<1x32xf32> to vector<8x32xf32>
    %265 = arith.addf %263, %264 : vector<8x32xf32>
    %cst_70 = arith.constant dense<0.000000e+00> : vector<8x128xf32>
    %266 = tpu.matmul %265, %240, %cst_70 {dimension_numbers = #tpu.dot_dimension_numbers<[1], [0], [0], [1], [0, 0, 1, 1], [], []>} : vector<8x32xf32>, vector<32x128xf32>, vector<8x128xf32> -> vector<8x128xf32>
    %267 = vector.broadcast %243 : vector<1x128xf32> to vector<8x128xf32>
    %268 = arith.addf %266, %267 : vector<8x128xf32>
    %269 = vector.shape_cast %268 : vector<8x128xf32> to vector<1x8x128xf32>
    %c0_71 = arith.constant 0 : index
    %c0_72 = arith.constant 0 : index
    %c0_73 = arith.constant 0 : index
    %270 = vector.load %arg7[%c0_71, %c0_72, %c0_73] : memref<1x8x128xf32, #tpu.memory_space<vmem>>, vector<1x8x128xf32>
    tpu.vector_store %arg7[%c0_71, %c0_72, %c0_73], %269 {strides = array<i32>} : memref<1x8x128xf32, #tpu.memory_space<vmem>>, vector<1x8x128xf32>,
    return
  }
  func.func @transform_0(%arg0: i32) -> (i32, i32, i32) {
    %c0_i32 = arith.constant 0 : i32
    %c0_i32_0 = arith.constant 0 : i32
    %c0_i32_1 = arith.constant 0 : i32
    return %arg0, %c0_i32, %c0_i32_0 : i32, i32, i32
  }
  func.func @transform_1(%arg0: i32) -> (i32, i32) {
    %c0_i32 = arith.constant 0 : i32
    %c0_i32_0 = arith.constant 0 : i32
    %c0_i32_1 = arith.constant 0 : i32
    return %c0_i32, %c0_i32_0 : i32, i32
  }
  func.func @transform_2(%arg0: i32) -> (i32, i32) {
    %c0_i32 = arith.constant 0 : i32
    %c0_i32_0 = arith.constant 0 : i32
    %c0_i32_1 = arith.constant 0 : i32
    return %c0_i32, %c0_i32_0 : i32, i32
  }
  func.func @transform_3(%arg0: i32) -> (i32, i32, i32) {
    %c0_i32 = arith.constant 0 : i32
    %c0_i32_0 = arith.constant 0 : i32
    %c0_i32_1 = arith.constant 0 : i32
    %c0_i32_2 = arith.constant 0 : i32
    return %c0_i32, %c0_i32_0, %c0_i32_1 : i32, i32, i32
  }
  func.func @transform_4(%arg0: i32) -> (i32, i32, i32) {
    %c0_i32 = arith.constant 0 : i32
    %c0_i32_0 = arith.constant 0 : i32
    %c0_i32_1 = arith.constant 0 : i32
    %c0_i32_2 = arith.constant 0 : i32
    return %c0_i32, %c0_i32_0, %c0_i32_1 : i32, i32, i32
  }
  func.func @transform_5(%arg0: i32) -> (i32, i32) {
    %c0_i32 = arith.constant 0 : i32
    %c0_i32_0 = arith.constant 0 : i32
    %c0_i32_1 = arith.constant 0 : i32
    return %c0_i32, %c0_i32_0 : i32, i32
  }
  func.func @transform_6(%arg0: i32) -> (i32, i32, i32) {
    %c0_i32 = arith.constant 0 : i32
    %c0_i32_0 = arith.constant 0 : i32
    %c0_i32_1 = arith.constant 0 : i32
    return %arg0, %c0_i32, %c0_i32_0 : i32, i32, i32
  }
}

</mosaic_0001>

<bundles_post_ra>
// kernel: vit_forward.1
= control target key start
LH: loop header
LB: loop body
LE: loop exit
PB: predicated region body
PF: predicated region fallthrough
CT: control target
= control target key end

     0   :  { %s4416_s21 = smov 0   ;;  %s5128_s0 = inlined_call_operand.vmem [shape: f32[2,8,192], index: 0, kind: input, shape index: {}]   ;;  %s5129_s1 = inlined_call_operand.vmem [shape: f32[192,32], index: 1, kind: input, shape index: {}]   ;;  %s5130_s2 = inlined_call_operand.vmem [shape: f32[8,32], index: 2, kind: input, shape index: {}]   ;;  %s5131_s3 = inlined_call_operand.vmem [shape: f32[2,32,256], index: 3, kind: input, shape index: {}]   ;;  %s5132_s4 = inlined_call_operand.vmem [shape: f32[2,8,96], index: 4, kind: input, shape index: {}]   ;;  %s5133_s5 = inlined_call_operand.vmem [shape: f32[35,128], index: 5, kind: input, shape index: {}]   ;;  %s5134_s6 = inlined_call_operand.vmem [shape: f32[2,8,128], index: 6, kind: output, shape index: {}]  }
   0x1 LB: > { %s3821_s22 = sadd.s32 4294967295, %s4364_s21   ;;  %p3825_p0 = scmp.ge.s32.totalorder %s4364_s21, 1  ;;  %s4364_s21 = sphi %s4416_s21, %s16_s21  }
   0x2   : > { %p212_p1 = scmp.lt.s32.totalorder %s4364_s21, 3 }
   0x4   : > { %p213_p2 = pnand %p3825_p0, %p212_p1 }
   0x5   : > { %v252_v0 = vld [vmem:[%s5129_s1] sm:$0xff] (!%p213_p2)  ;;  %v253_v1 = vld [vmem:[%s5129_s1 + $0x8] sm:$0xff] (!%p213_p2)  ;;  %v254_v2 = vld [vmem:[%s5129_s1 + $0x10] sm:$0xff] (!%p213_p2)  ;;  %p241_p3 = scmp.lt.s32.totalorder (!%p213_p2), %s3821_s22, 1  ;;  %v4366_v3 = vmov (!%p213_p2), 0.0|0.0   ;;  %vm276_vm0 = vcmask (!%p213_p2), 523264   ;;  %v352_v59 = vlaneseq (!%p213_p2) }
   0x6   : > { %216 = sbr.rel (%p213_p2) target bundleno = 6153 (0x1809), region = 44  ;;  %4155 = vmatprep.subr.bf16.mxu0 (!%p213_p2), %v4366_v3  ;;  %v4156_v4 = vpack.c.bf16 (!%p213_p2), %v253_v1, %v252_v0  ;;  %v255_v5 = vld [vmem:[%s5129_s1 + $0x18] sm:$0xff] (!%p213_p2)  ;;  %4191 = vmatprep.subr.bf16.mxu1 (!%p213_p2), %v4366_v3  ;;  %v256_v7 = vld [vmem:[%s5129_s1 + $0x20] sm:$0xff] (!%p213_p2)  ;;  %v257_v8 = vld [vmem:[%s5129_s1 + $0x28] sm:$0xff] (!%p213_p2)  ;;  %vm365_vm1 = vcmask (!%p213_p2), 261120   ;;  %vm4367_vm2 = vmmov (!%p213_p2), 0  }
   0x7   : > { %v4159_v6 = vpack.c.bf16 (!%p213_p2), %v255_v5, %v254_v2  ;;  %v4162_v9 = vpack.c.bf16 (!%p213_p2), %v257_v8, %v256_v7  ;;  %v258_v10 = vld [vmem:[%s5129_s1 + $0x30] sm:$0xff] (!%p213_p2)  ;;  %v259_v11 = vld [vmem:[%s5129_s1 + $0x38] sm:$0xff] (!%p213_p2)  ;;  %v260_v14 = vld [vmem:[%s5129_s1 + $0x40] sm:$0xff] (!%p213_p2)  ;;  %v4368_v55 = vmov (!%p213_p2), 0.0   ;;  %v4563_v61 = vshrl.u32 (!%p213_p2), %v352_v59, 7  ;;  %s4369_s20 = smov (!%p213_p2), 104  }
   0x8   : > { %4157 = vmatpush1.bf16.msra.mxu0 (!%p213_p2), %v4156_v4  ;;  %v4165_v13 = vpack.c.bf16 (!%p213_p2), %v259_v11, %v258_v10  ;;  %v261_v15 = vld [vmem:[%s5129_s1 + $0x48] sm:$0xff] (!%p213_p2)  ;;  %v262_v17 = vld [vmem:[%s5129_s1 + $0x50] sm:$0xff] (!%p213_p2)  ;;  %v263_v18 = vld [vmem:[%s5129_s1 + $0x58] sm:$0xff] (!%p213_p2)  ;;  %3984 = vmatprep.mubr.msk.f32.mxu1 (!%p213_p2), %vm4367_vm2, %v4368_v55  ;;  %s4370_s23 = smov (!%p213_p2), 120   ;;  %s4371_s24 = smov (!%p213_p2), 112   ;;  %vm917_vm3 = vcmask (!%p213_p2), 64512  }
   0x9   : > { %4158 = vmatprep.subr.bf16.mxu0 (!%p213_p2), %v4366_v3  ;;  %v4168_v16 = vpack.c.bf16 (!%p213_p2), %v261_v15, %v260_v14  ;;  %v4171_v19 = vpack.c.bf16 (!%p213_p2), %v263_v18, %v262_v17  ;;  %v264_v20 = vld [vmem:[%s5129_s1 + $0x60] sm:$0xff] (!%p213_p2)  ;;  %v265_v21 = vld [vmem:[%s5129_s1 + $0x68] sm:$0xff] (!%p213_p2)  ;;  %v266_v23 = vld [vmem:[%s5129_s1 + $0x70] sm:$0xff] (!%p213_p2)  ;;  %v4566_v62 = vsub.s32 (!%p213_p2), 0, %v4563_v61  ;;  %v4574_v0 = vsub.s32 (!%p213_p2), 1, %v4563_v61  ;;  %s4372_s25 = smov (!%p213_p2), 96  }
   0xa   : > { %v4174_v22 = vpack.c.bf16 (!%p213_p2), %v265_v21, %v264_v20  ;;  %v267_v24 = vld [vmem:[%s5129_s1 + $0x78] sm:$0xff] (!%p213_p2)  ;;  %v268_v26 = vld [vmem:[%s5129_s1 + $0x80] sm:$0xff] (!%p213_p2)  ;;  %v269_v27 = vld [vmem:[%s5129_s1 + $0x88] sm:$0xff] (!%p213_p2)  ;;  %v4584_v8 = vsub.s32 (!%p213_p2), 2, %v4563_v61  ;;  %v4373_v20 = vmov (!%p213_p2), 1983009808  }
   0xb   : > { %v4177_v25 = vpack.c.bf16 (!%p213_p2), %v267_v24, %v266_v23  ;;  %v4180_v28 = vpack.c.bf16 (!%p213_p2), %v269_v27, %v268_v26  ;;  %v270_v29 = vld [vmem:[%s5129_s1 + $0x90] sm:$0xff] (!%p213_p2)  ;;  %v271_v30 = vld [vmem:[%s5129_s1 + $0x98] sm:$0xff] (!%p213_p2)  ;;  %v272_v32 = vld [vmem:[%s5129_s1 + $0xa0] sm:$0xff] (!%p213_p2)  ;;  %v481_v21 = vunpack.c.l.s4 (!%p213_p2), %v4373_v20  ;;  %s4376_s26 = smov (!%p213_p2), 64   ;;  %s4377_s27 = smov (!%p213_p2), 32   ;;  %vm1707_vm5 = vcmask (!%p213_p2), 130048  }
   0xc   : > { %4160 = vmatpush1.bf16.msra.mxu0 (!%p213_p2), %v4159_v6  ;;  %v4183_v31 = vpack.c.bf16 (!%p213_p2), %v271_v30, %v270_v29  ;;  %v273_v33 = vld [vmem:[%s5129_s1 + $0xa8] sm:$0xff] (!%p213_p2)  ;;  %v274_v35 = vld [vmem:[%s5129_s1 + $0xb0] sm:$0xff] (!%p213_p2)  ;;  %v275_v36 = vld [vmem:[%s5129_s1 + $0xb8] sm:$0xff] (!%p213_p2)  ;;  %s4378_s28 = smov (!%p213_p2), 16   ;;  %s4379_s29 = smov (!%p213_p2), 8   ;;  %vm1709_vm6 = vcmask (!%p213_p2), 195584  }
   0xd   : > { %s5138_s22 = smov (!%p241_p3, %s3821_s22), 1  ;;  %4161 = vmatprep.subr.bf16.mxu0 %v4366_v3  ;;  %v4186_v34 = vpack.c.bf16 %v273_v33, %v272_v32  ;;  %v4189_v37 = vpack.c.bf16 %v275_v36, %v274_v35  ;;  %v350_v39 = vld [vmem:[%s5130_s2] sm:$0xff]  ;;  %v4538_v50 = vld [vmem:[%s5131_s3 + $0x10] sm:$0xff]  ;;  %s4380_s30 = smov 24   ;;  %vm4813_vm7 = vmpackc.low %vm276_vm0, %vm276_vm0 }
   0xe   : > { %s3898_s11 = sshll.u32 %s5138_s22, 4  ;;  %v4533_v49 = vld [vmem:[%s5131_s3] sm:$0xff]  ;;  %v4552_v54 = vld [vmem:[%s5131_s3 + $0x30] sm:$0xff]  ;;  %s3828_s8 = sshll.u32 %s5138_s22, 3 }
   0xf   : > { %s4451_s14 = scalar_lea.vmem %s5128_s0, %s3898_s11  ;;  %v4543_v51 = vld [vmem:[%s5131_s3 + $0x20] sm:$0xff]  ;;  %v4272_v52 = vpack.i.bf16 %v4538_v50, %v4533_v49  ;;  %v4192_v53 = vpack.c.bf16 %v4538_v50, %v4533_v49  ;;  %s249_s10 = scalar_lea.vmem %s5134_s6, %s3828_s8 }
  0x10   : > { %v251_v12 = vld [vmem:[%s4451_s14 + $0x8] sm:$0xff]  ;;  %4163 = vmatpush1.bf16.msra.mxu0 %v4162_v9  ;;  %v250_v38 = vld [vmem:[%s4451_s14] sm:$0xff]  ;;  %v4195_v56 = vpack.c.bf16 %v4552_v54, %v4543_v51 }
  0x11   : > { %3829 = vmatprep.mubr.msk.f32.mxu0 %vm276_vm0, %v251_v12  ;;  %4164 = vmatprep.subr.bf16.mxu0 %v4366_v3  ;;  %v4571_v63 = vld [vmem:[%s5132_s4] sm:$0xff] }
  0x12   : > { %4193 = vmatpush3.bf16.msra.mxu1 %v4192_v53  ;;  %v383_v1 = vrot.slane %v4571_v63, %v4566_v62  ;;  %v388_v5 = vrot.slane %v4571_v63, %v4574_v0  ;;  %v393_v9 = vrot.slane %v4571_v63, %v4584_v8 }
  0x13   : > { %4194 = vmatprep.subr.bf16.mxu1 %v4366_v3 }
  0x14   : > { %4166 = vmatpush1.bf16.msra.mxu0 %v4165_v13 }
  0x15   : > { %4167 = vmatprep.subr.bf16.mxu0 %v4366_v3 }
  0x16   : > { %4196 = vmatpush3.bf16.msra.mxu1 %v4195_v56 }
  0x17   : > { %3987 = vmatprep.subr.mxu1 %v4368_v55 }
  0x18   : > { %4169 = vmatpush1.bf16.msra.mxu0 %v4168_v16 }
  0x19   : > { %4170 = vmatprep.subr.bf16.mxu0 %v4366_v3 }
  0x1c   : > { %4172 = vmatpush1.bf16.msra.mxu0 %v4171_v19 }
  0x1d   : > { %4173 = vmatprep.subr.bf16.mxu0 %v4366_v3 }
  0x20   : > { %4175 = vmatpush1.bf16.msra.mxu0 %v4174_v22  ;;  %v4374_v22 = vmov 1934713408  }
  0x21   : > { %4176 = vmatprep.subr.bf16.mxu0 %v4366_v3  ;;  %v513_v23 = vunpack.c.l.s4 %v4374_v22 }
  0x23   : > { %v514_v26 = vunpack.c.0.s8 %v513_v23 }
  0x24   : > { %4178 = vmatpush1.bf16.msra.mxu0 %v4177_v25  ;;  %v482_v25 = vunpack.c.0.s8 %v481_v21 }
  0x25   : > { %4179 = vmatprep.subr.bf16.mxu0 %v4366_v3  ;;  %v4618_v33 = vsub.s32 %v514_v26, %v4563_v61 }
  0x26   : > { %v4615_v30 = vsub.s32 %v482_v25, %v4563_v61 }
  0x28   : > { %4181 = vmatpush1.bf16.msra.mxu0 %v4180_v28 }
  0x29   : > { %4182 = vmatprep.subr.bf16.mxu0 %v4366_v3 }
  0x2c   : > { %4184 = vmatpush1.bf16.msra.mxu0 %v4183_v31 }
  0x2d   : > { %4185 = vmatprep.subr.bf16.mxu0 %v4366_v3 }
  0x30   : > { %4187 = vmatpush1.bf16.msra.mxu0 %v4186_v34 }
  0x31   : > { %4188 = vmatprep.subr.bf16.mxu0 %v4366_v3 }
  0x34   : > { %4190 = vmatpush1.bf16.msra.mxu0 %v4189_v37 }
  0x35   : > { %4203 = vmatprep.subr.bf16.mxu0 %v4366_v3 }
  0x37   : > { %345 = vmatmul.mubr.f32.vlgmr.msra.gmra.mrb[0].mxu0 %v250_v38 }
  0x38   : > { %4046 = vmatprep.mubr.msk.f32.mxu0 %vm4367_vm2, %v4368_v55 }
 0x10a   : > { %v346_v40 = vpop.f32.mrb[0].mxu0 }
 0x10b   : > { %v4524_v41 = vadd.f32 %v350_v39, %v346_v40  ;;  %v348_v42 = vpop.f32.mrb[1].mxu0 }
 0x10d   : > { %v366_v43 = vsel %vm365_vm1, %v4524_v41, 0.0 }
 0x10e   : > { %367 = vadd.xlane.f32.xlu0 %v366_v43 }
 0x19b   : > { %v368_v44 = vpop.xlane.xlu0 %367 }
 0x19c   : > { %v370_v45 = vmul.f32 0.03125, %v368_v44 }
 0x19e   : > { %v371_v46 = vsub.f32 %v4524_v41, %v370_v45 }
 0x1a0   : > { %v372_v47 = vmul.f32 %v371_v46, %v371_v46 }
 0x1a2   : > { %v373_v48 = vsel %vm365_vm1, %v372_v47, 0.0 }
 0x1a3   : > { %374 = vadd.xlane.f32.xlu0 %v373_v48 }
 0x230   : > { %v375_v57 = vpop.xlane.xlu0 %374 }
 0x231   : > { %v376_v58 = vmul.f32 0.03125, %v375_v57 }
 0x233   : > { %v377_v60 = vadd.f32 1e-06, %v376_v58 }
 0x235   : > { %4312 = vrsqrt.f32 %v377_v60 }
 0x23f   : > { %v4313_v2 = vpop.eup %4312 }
 0x240   : > { %v379_v4 = vmul.f32 %v4313_v2, %v371_v46 }
 0x242   : > { %v384_v6 = vmul.f32 %v383_v1, %v379_v4 }
 0x244   : > { %v389_v7 = vadd.f32 %v388_v5, %v384_v6 }
 0x246   : > { %3985 = vmatmul.mubr.msk.f32.vlgmr.msra.gmra.mrb[0].mxu1 %vm365_vm1, %v389_v7 }
 0x247   : > { %3989 = vmatprep.mubr.msk.f32.mxu1 %vm4367_vm2, %v4368_v55 }
 0x319   : > { %v463_v10 = vpop.f32.mrb[0].mxu1 }
 0x31a   : > { %v4588_v11 = vadd.f32 %v463_v10, %v393_v9  ;;  %v3986_v12 = vpop.f32.mrb[1].mxu1 }
 0x31c   : > { %619 = vrot.lane.b32.xlu0 %v4588_v11, %s4369_s20  ;;  %615 = vrot.lane.b32.xlu1 %v4588_v11, %s4370_s23  ;;  %v467_v13 = vmul.f32 0.35355338, %v4588_v11 }
 0x320   : > { %617 = vrot.lane.b32.xlu1 %v4588_v11, %s4371_s24  ;;  %475 = vrot.lane.b32.xlu0 %v467_v13, %s4369_s20 }
 0x324   : > { %621 = vrot.lane.b32.xlu1 %v4588_v11, %s4372_s25 }
 0x328   : > { %469 = vrot.lane.b32.xlu1 %v467_v13, %s4370_s23 }
 0x38e   : > { %v4601_v14 = vpop.permute.xlu1 %615  ;;  %v4609_v16 = vpop.permute.xlu0 %619 }
 0x38f   : > { %623 = vrot.lane.b32.xlu1 %v4601_v14, %s4372_s25 }
 0x392   : > { %v4605_v15 = vpop.permute.xlu1 %617  ;;  %v476_v34 = vpop.permute.xlu0 %475 }
 0x393   : > { %625 = vrot.lane.b32.xlu1 %v4605_v15, %s4372_s25 }
 0x396   : > { %v622_v17 = vpop.permute.xlu1 %621 }
 0x397   : > { %627 = vrot.lane.b32.xlu1 %v4609_v16, %s4372_s25 }
 0x39a   : > { %v470_v18 = vpop.permute.xlu1 %469 }
 0x39b   : > { %472 = vrot.lane.b32.xlu1 %v467_v13, %s4371_s24  ;;  %v494_v39 = vcombine.low %v470_v18, %v476_v34  ;;  %v495_v40 = vcombine.high %v470_v18, %v476_v34 }
 0x39d   : > { %v502_v60 = vrot.slane %v494_v39, %v4615_v30  ;;  %v509_v1 = vrot.slane %v495_v40, %v4615_v30 }
 0x401   : > { %v624_v19 = vpop.permute.xlu1 %623 }
 0x405   : > { %v626_v24 = vpop.permute.xlu1 %625 }
 0x406   : > { %v633_v27 = vcombine.low %v622_v17, %v626_v24  ;;  %v634_v28 = vcombine.high %v622_v17, %v626_v24 }
 0x408   : > { %v641_v35 = vrot.slane %v633_v27, %v4615_v30  ;;  %v648_v36 = vrot.slane %v634_v28, %v4615_v30 }
 0x409   : > { %v628_v29 = vpop.permute.xlu1 %627 }
 0x40a   : > { %v649_v31 = vcombine.low %v624_v19, %v628_v29  ;;  %v650_v32 = vcombine.high %v624_v19, %v628_v29 }
 0x40c   : > { %v657_v37 = vrot.slane %v649_v31, %v4615_v30  ;;  %v664_v38 = vrot.slane %v650_v32, %v4615_v30 }
 0x40d   : > { %v473_v42 = vpop.permute.xlu1 %472 }
 0x40e   : > { %v665_v43 = vcombine.low %v641_v35, %v657_v37  ;;  %v666_v44 = vcombine.high %v641_v35, %v657_v37  ;;  %v681_v45 = vcombine.low %v648_v36, %v664_v38  ;;  %v682_v46 = vcombine.high %v648_v36, %v664_v38 }
 0x40f   : > { %v478_v47 = vcombine.low %v467_v13, %v473_v42  ;;  %v479_v48 = vcombine.high %v467_v13, %v473_v42 }
 0x410   : > { %v673_v53 = vrot.slane %v665_v43, %v4618_v33  ;;  %v680_v56 = vrot.slane %v666_v44, %v4618_v33  ;;  %v689_v57 = vrot.slane %v681_v45, %v4618_v33  ;;  %v696_v58 = vrot.slane %v682_v46, %v4618_v33 }
 0x411   : > { %v486_v2 = vrot.slane %v478_v47, %v4615_v30  ;;  %v493_v4 = vrot.slane %v479_v48, %v4615_v30 }
 0x412   : > { %v701_v5 = vcombine.low %v673_v53, %v680_v56  ;;  %v3833_v6 = vcombine.high %v673_v53, %v680_v56  ;;  %v717_v7 = vcombine.low %v689_v57, %v696_v58  ;;  %v3834_v9 = vcombine.high %v689_v57, %v696_v58 }
 0x413   : > { %v510_v10 = vcombine.low %v486_v2, %v502_v60  ;;  %v511_v12 = vcombine.high %v486_v2, %v502_v60  ;;  %v526_v13 = vcombine.low %v493_v4, %v509_v1  ;;  %v527_v17 = vcombine.high %v493_v4, %v509_v1 }
 0x414   : > { %v708_v18 = vrot.slane %v701_v5, %v4615_v30  ;;  %v716_v19 = vrot.slane %v3833_v6, %v4615_v30  ;;  %v724_v20 = vrot.slane %v717_v7, %v4615_v30  ;;  %v732_v21 = vrot.slane %v3834_v9, %v4615_v30 }
 0x415   : > { %v518_v22 = vrot.slane %v510_v10, %v4618_v33  ;;  %v525_v23 = vrot.slane %v511_v12, %v4618_v33  ;;  %v534_v24 = vrot.slane %v526_v13, %v4618_v33  ;;  %v541_v25 = vrot.slane %v527_v17, %v4618_v33 }
 0x416   : > { %v733_v26 = vcombine.low %v708_v18, %v716_v19  ;;  %v749_v27 = vcombine.low %v724_v20, %v732_v21  ;;  %v734_v44 = vcombine.high %v708_v18, %v716_v19  ;;  %v750_v45 = vcombine.high %v724_v20, %v732_v21 }
 0x417   : > { %v546_v28 = vcombine.low %v518_v22, %v525_v23  ;;  %v3831_v29 = vcombine.high %v518_v22, %v525_v23  ;;  %v562_v31 = vcombine.low %v534_v24, %v541_v25  ;;  %v3832_v32 = vcombine.high %v534_v24, %v541_v25 }
 0x418   : > { %v741_v34 = vrot.slane %v733_v26, %v4618_v33  ;;  %v757_v35 = vrot.slane %v749_v27, %v4618_v33  ;;  %v748_v58 = vrot.slane %v734_v44, %v4618_v33  ;;  %v764_v60 = vrot.slane %v750_v45, %v4618_v33 }
 0x419   : > { %v553_v36 = vrot.slane %v546_v28, %v4615_v30  ;;  %v561_v37 = vrot.slane %v3831_v29, %v4615_v30  ;;  %v569_v38 = vrot.slane %v562_v31, %v4615_v30  ;;  %v577_v39 = vrot.slane %v3832_v32, %v4615_v30 }
 0x41a   : > { %v765_v40 = vcombine.low %v741_v34, %v757_v35  ;;  %v766_v57 = vcombine.high %v741_v34, %v757_v35  ;;  %v767_v5 = vcombine.low %v748_v58, %v764_v60  ;;  %v768_v7 = vcombine.high %v748_v58, %v764_v60 }
 0x41b   : > { %v578_v42 = vcombine.low %v553_v36, %v561_v37  ;;  %v594_v43 = vcombine.low %v569_v38, %v577_v39  ;;  %v579_v48 = vcombine.high %v553_v36, %v561_v37  ;;  %v595_v53 = vcombine.high %v569_v38, %v577_v39 }
 0x41c   : > { %3988 = vmatpush3.xpose.msk.msra.mxu1 %vm917_vm3, %v765_v40  ;;  %v353_v10 = vand.u32 127, %v352_v59  ;;  %v4375_v12 = vmov -1e+30  }
 0x41d   : > { %3992 = vmatprep.subr.mxu1 %v4368_v55  ;;  %v586_v46 = vrot.slane %v578_v42, %v4618_v33  ;;  %v602_v47 = vrot.slane %v594_v43, %v4618_v33  ;;  %v593_v2 = vrot.slane %v579_v48, %v4618_v33  ;;  %v609_v4 = vrot.slane %v595_v53, %v4618_v33 }
 0x41e   : > { %vm354_vm4 = vcmp.lt.s32.totalorder %v353_v10, 5 }
 0x41f   : > { %v610_v56 = vcombine.low %v586_v46, %v602_v47  ;;  %v611_v1 = vcombine.high %v586_v46, %v602_v47  ;;  %v612_v6 = vcombine.low %v593_v2, %v609_v4  ;;  %v613_v9 = vcombine.high %v593_v2, %v609_v4 }
 0x420   : > { %v4673_v13 = vsel %vm354_vm4, 0.0, %v4375_v12 }
 0x421   : > { %3990 = vmatmul.mubr.msk.f32.vlgmr.msra.gmra.mrb[2].mxu1 %vm917_vm3, %v610_v56 }
 0x422   : > { %3993 = vmatpush3.xpose.msk.msra.mxu1 %vm917_vm3, %v766_v57  ;;  %3994 = vmatprep.mubr.msk.f32.mxu1 %vm4367_vm2, %v4368_v55 }
 0x423   : > { %3997 = vmatprep.subr.mxu1 %v4368_v55 }
 0x425   : > { %3995 = vmatmul.mubr.msk.f32.vlgmr.msra.gmra.mrb[4].mxu1 %vm917_vm3, %v611_v1 }
 0x426   : > { %3998 = vmatpush3.xpose.msk.msra.mxu1 %vm917_vm3, %v767_v5  ;;  %3999 = vmatprep.mubr.msk.f32.mxu1 %vm4367_vm2, %v4368_v55 }
 0x427   : > { %4002 = vmatprep.subr.mxu1 %v4368_v55 }
 0x429   : > { %4000 = vmatmul.mubr.msk.f32.vlgmr.msra.gmra.mrb[6].mxu1 %vm917_vm3, %v612_v6 }
 0x42a   : > { %4003 = vmatpush3.xpose.msk.msra.mxu1 %vm917_vm3, %v768_v7  ;;  %4004 = vmatprep.mubr.msk.f32.mxu1 %vm4367_vm2, %v4368_v55 }
 0x42b   : > { %4007 = vmatprep.subr.mxu1 %v4368_v55 }
 0x42d   : > { %4005 = vmatmul.mubr.msk.f32.vlgmr.msra.gmra.mrb[8].mxu1 %vm917_vm3, %v613_v9 }
 0x42e   : > { %4009 = vmatprep.mubr.msk.f32.mxu1 %vm4367_vm2, %v4368_v55 }
 0x4f4   : > { %v990_v17 = vpop.f32.mrb[2].mxu1 }
 0x4f5   : > { %v991_v18 = vadd.f32 %v990_v17, %v4673_v13  ;;  %v3991_v19 = vpop.f32.mrb[3].mxu1 }
 0x4f7   : > { %v1222_v20 = vsel %vm917_vm3, %v991_v18, -inf }
 0x4f8   : > { %1223 = vmax.xlane.f32.xlu1 %v1222_v20  ;;  %v1066_v21 = vpop.f32.mrb[4].mxu1 }
 0x4f9   : > { %v1067_v22 = vadd.f32 %v1066_v21, %v4673_v13  ;;  %v3996_v23 = vpop.f32.mrb[5].mxu1 }
 0x4fb   : > { %v1225_v24 = vsel %vm917_vm3, %v1067_v22, -inf }
 0x4fc   : > { %1226 = vmax.xlane.f32.xlu0 %v1225_v24  ;;  %v1142_v25 = vpop.f32.mrb[6].mxu1 }
 0x4fd   : > { %v1143_v59 = vadd.f32 %v1142_v25, %v4673_v13  ;;  %v4001_v26 = vpop.f32.mrb[7].mxu1 }
 0x4ff   : > { %v1228_v27 = vsel %vm917_vm3, %v1143_v59, -inf }
 0x500   : > { %1229 = vmax.xlane.f32.xlu0 %v1228_v27  ;;  %v1218_v28 = vpop.f32.mrb[8].mxu1 }
 0x501   : > { %v1219_v29 = vadd.f32 %v1218_v28, %v4673_v13  ;;  %v4006_v31 = vpop.f32.mrb[9].mxu1 }
 0x503   : > { %v1231_v32 = vsel %vm917_vm3, %v1219_v29, -inf }
 0x504   : > { %1232 = vmax.xlane.f32.xlu1 %v1231_v32 }
 0x515   : > { %771 = vrot.lane.b32.xlu1 %v4601_v14, %s4376_s26 }
 0x516   : > { %769 = vrot.lane.b32.xlu0 %v4588_v11, %s4376_s26 }
 0x519   : > { %773 = vrot.lane.b32.xlu1 %v4605_v15, %s4376_s26 }
 0x585   : > { %v1224_v34 = vpop.xlane.xlu1 %1223 }
 0x586   : > { %v1234_v35 = vsub.f32 %v991_v18, %v1224_v34 }
 0x588   : > { %v1238_v36 = vmul.f32 1.442695, %v1234_v35 }
 0x589   : > { %v1227_v37 = vpop.xlane.xlu0 %1226 }
 0x58a   : > { %4314 = vpow2.f32 %v1238_v36  ;;  %v1235_v38 = vsub.f32 %v1067_v22, %v1227_v37 }
 0x58c   : > { %v1240_v39 = vmul.f32 1.442695, %v1235_v38 }
 0x58d   : > { %v1230_v40 = vpop.xlane.xlu0 %1229 }
 0x58e   : > { %4316 = vpow2.f32 %v1240_v39  ;;  %v1236_v42 = vsub.f32 %v1143_v59, %v1230_v40 }
 0x590   : > { %v1242_v43 = vmul.f32 1.442695, %v1236_v42 }
 0x591   : > { %v1233_v47 = vpop.xlane.xlu1 %1232  ;;  %v770_v60 = vpop.permute.xlu0 %769 }
 0x592   : > { %4318 = vpow2.f32 %v1242_v43  ;;  %v1237_v48 = vsub.f32 %v1219_v29, %v1233_v47 }
 0x594   : > { %v4315_v44 = vpop.eup %4314  ;;  %v1244_v53 = vmul.f32 1.442695, %v1237_v48 }
 0x595   : > { %v1246_v14 = vsel %vm917_vm3, %v4315_v44, 0.0  ;;  %v772_v58 = vpop.permute.xlu1 %771 }
 0x596   : > { %1247 = vadd.xlane.f32.xlu0 %v1246_v14  ;;  %4320 = vpow2.f32 %v1244_v53 }
 0x598   : > { %v4690_v11 = vpop.eup %4316 }
 0x599   : > { %v1249_v15 = vsel %vm917_vm3, %v4690_v11, 0.0  ;;  %v774_v1 = vpop.permute.xlu1 %773 }
 0x59a   : > { %1250 = vadd.xlane.f32.xlu1 %v1249_v15  ;;  %v781_v4 = vcombine.low %v770_v60, %v774_v1  ;;  %v782_v5 = vcombine.high %v770_v60, %v774_v1 }
 0x59c   : > { %v4694_v45 = vpop.eup %4318  ;;  %v796_v10 = vrot.slane %v782_v5, %v4615_v30 }
 0x59d   : > { %v1252_v46 = vsel %vm917_vm3, %v4694_v45, 0.0 }
 0x59e   : > { %1253 = vadd.xlane.f32.xlu1 %v1252_v46 }
 0x5a0   : > { %v4700_v56 = vpop.eup %4320 }
 0x5a1   : > { %v1255_v57 = vsel %vm917_vm3, %v4700_v56, 0.0 }
 0x5ac   : > { %775 = vrot.lane.b32.xlu0 %v4609_v16, %s4376_s26  ;;  %v789_v16 = vrot.slane %v781_v4, %v4615_v30 }
 0x5cb   : > { %1256 = vadd.xlane.f32.xlu0 %v1255_v57 }
 0x5e1   : > { %4273 = vrot.lane.b32.xlu0 %v4272_v52, %s4377_s27 }
 0x623   : > { %v1248_v2 = vpop.xlane.xlu0 %1247 }
 0x624   : > { %4322 = vrcp.f32 %v1248_v2 }
 0x627   : > { %v776_v6 = vpop.permute.xlu0 %775  ;;  %v1251_v18 = vpop.xlane.xlu1 %1250 }
 0x628   : > { %v797_v7 = vcombine.low %v772_v58, %v776_v6  ;;  %v798_v9 = vcombine.high %v772_v58, %v776_v6  ;;  %4324 = vrcp.f32 %v1251_v18 }
 0x62a   : > { %v805_v12 = vrot.slane %v797_v7, %v4615_v30  ;;  %v812_v17 = vrot.slane %v798_v9, %v4615_v30 }
 0x62b   : > { %v1254_v31 = vpop.xlane.xlu1 %1253 }
 0x62c   : > { %v813_v19 = vcombine.low %v789_v16, %v805_v12  ;;  %v814_v20 = vcombine.high %v789_v16, %v805_v12  ;;  %v829_v21 = vcombine.low %v796_v10, %v812_v17  ;;  %v830_v22 = vcombine.high %v796_v10, %v812_v17 }
 0x62d   : > { %4326 = vrcp.f32 %v1254_v31 }
 0x62e   : > { %v821_v23 = vrot.slane %v813_v19, %v4618_v33  ;;  %v828_v24 = vrot.slane %v814_v20, %v4618_v33  ;;  %v837_v25 = vrot.slane %v829_v21, %v4618_v33  ;;  %v844_v59 = vrot.slane %v830_v22, %v4618_v33  ;;  %v4323_v39 = vpop.eup %4322 }
 0x62f   : > { %v1259_v47 = vmul.f32 %v4323_v39, %v4315_v44 }
 0x630   : > { %v849_v26 = vcombine.low %v821_v23, %v828_v24  ;;  %v3835_v27 = vcombine.high %v821_v23, %v828_v24  ;;  %v865_v28 = vcombine.low %v837_v25, %v844_v59  ;;  %v3836_v29 = vcombine.high %v837_v25, %v844_v59 }
 0x632   : > { %v856_v32 = vrot.slane %v849_v26, %v4615_v30  ;;  %v864_v34 = vrot.slane %v3835_v27, %v4615_v30  ;;  %v872_v35 = vrot.slane %v865_v28, %v4615_v30  ;;  %v880_v36 = vrot.slane %v3836_v29, %v4615_v30  ;;  %v4325_v46 = vpop.eup %4324 }
 0x633   : > { %v1261_v58 = vmul.f32 %v4325_v46, %v4690_v11 }
 0x634   : > { %v881_v37 = vcombine.low %v856_v32, %v864_v34  ;;  %v897_v38 = vcombine.low %v872_v35, %v880_v36  ;;  %v882_v43 = vcombine.high %v856_v32, %v864_v34  ;;  %v898_v14 = vcombine.high %v872_v35, %v880_v36 }
 0x636   : > { %v889_v40 = vrot.slane %v881_v37, %v4618_v33  ;;  %v905_v42 = vrot.slane %v897_v38, %v4618_v33  ;;  %v896_v53 = vrot.slane %v882_v43, %v4618_v33  ;;  %v912_v57 = vrot.slane %v898_v14, %v4618_v33 }
 0x637   : > { %v4327_v60 = vpop.eup %4326 }
 0x638   : > { %v913_v15 = vcombine.low %v889_v40, %v905_v42  ;;  %v914_v48 = vcombine.high %v889_v40, %v905_v42  ;;  %v915_v44 = vcombine.low %v896_v53, %v912_v57  ;;  %v1263_v1 = vmul.f32 %v4327_v60, %v4694_v45 }
 0x639   : > { %v916_v2 = vcombine.high %v896_v53, %v912_v57  ;;  %v4277_v45 = vpack.i.bf16 %v4552_v54, %v4543_v51 }
 0x63a   : > { %4008 = vmatpush3.msra.mxu1 %v913_v15 }
 0x63b   : > { %4010 = vmatmul.mubr.msk.f32.vlgmr.msra.gmra.mrb[10].mxu1 %vm917_vm3, %v1259_v47  ;;  %4012 = vmatprep.subr.mxu1 %v4368_v55 }
 0x63c   : > { %4013 = vmatpush3.msra.mxu1 %v914_v48  ;;  %4014 = vmatprep.mubr.msk.f32.mxu1 %vm4367_vm2, %v4368_v55 }
 0x63d   : > { %4017 = vmatprep.subr.mxu1 %v4368_v55  ;;  %4278 = vrot.lane.b32.xlu1 %v4277_v45, %s4377_s27 }
 0x63f   : > { %4015 = vmatmul.mubr.msk.f32.vlgmr.msra.gmra.mrb[12].mxu1 %vm917_vm3, %v1261_v58 }
 0x640   : > { %4018 = vmatpush3.msra.mxu1 %v915_v44  ;;  %4019 = vmatprep.mubr.msk.f32.mxu1 %vm4367_vm2, %v4368_v55 }
 0x641   : > { %4022 = vmatprep.subr.mxu1 %v4368_v55 }
 0x643   : > { %4020 = vmatmul.mubr.msk.f32.vlgmr.msra.gmra.mrb[14].mxu1 %vm917_vm3, %v1263_v1 }
 0x644   : > { %4023 = vmatpush3.msra.mxu1 %v916_v2  ;;  %4024 = vmatprep.mubr.msk.f32.mxu1 %vm4367_vm2, %v4368_v55 }
 0x645   : > { %4197 = vmatprep.subr.bf16.mxu1 %v4366_v3 }
 0x658   : > { %v1257_v11 = vpop.xlane.xlu0 %1256 }
 0x659   : > { %4328 = vrcp.f32 %v1257_v11 }
 0x65c   : > { %v4274_v18 = vpop.permute.xlu0 %4273 }
 0x65d   : > { %v4276_v19 = vunpack.i.h.bf16 %v4274_v18  ;;  %v4275_v20 = vunpack.i.l.bf16 %v4274_v18 }
 0x65f   : > { %v4198_v22 = vpack.c.bf16 %v4276_v19, %v4275_v20 }
 0x663   : > { %v4329_v4 = vpop.eup %4328 }
 0x664   : > { %v1265_v5 = vmul.f32 %v4329_v4, %v4700_v56 }
 0x666   : > { %4025 = vmatmul.mubr.msk.f32.vlgmr.msra.gmra.mrb[16].mxu1 %vm917_vm3, %v1265_v5 }
 0x667   : > { %4035 = vmatprep.mubr.msk.f32.mxu1 %vm4367_vm2, %v4368_v55  ;;  %4199 = vmatpush3.bf16.msra.mxu1 %v4198_v22 }
 0x668   : > { %4200 = vmatprep.subr.bf16.mxu1 %v4366_v3 }
 0x6af   : > { %v4279_v51 = vpop.permute.xlu1 %4278 }
 0x6b0   : > { %v4281_v54 = vunpack.i.h.bf16 %v4279_v51  ;;  %v4280_v21 = vunpack.i.l.bf16 %v4279_v51 }
 0x6b2   : > { %v4201_v24 = vpack.c.bf16 %v4281_v54, %v4280_v21 }
 0x6b4   : > { %4202 = vmatpush3.bf16.msra.mxu1 %v4201_v24  ;;  %v361_v24 = vld [vmem:[%s5131_s3 + $0x28] sm:$0xff] }
 0x6b5   : > { %4209 = vmatprep.subr.bf16.mxu1 %v4366_v3 }
 0x70e   : > { %v1335_v6 = vpop.f32.mrb[10].mxu1 }
 0x70f   : > { %v4011_v7 = vpop.f32.mrb[11].mxu1 }
 0x712   : > { %v1408_v9 = vpop.f32.mrb[12].mxu1 }
 0x713   : > { %v4016_v56 = vpop.f32.mrb[13].mxu1 }
 0x716   : > { %v1481_v16 = vpop.f32.mrb[14].mxu1 }
 0x717   : > { %v1558_v10 = vcombine.low %v1335_v6, %v1481_v16  ;;  %v1559_v12 = vcombine.high %v1335_v6, %v1481_v16  ;;  %v4021_v17 = vpop.f32.mrb[15].mxu1 }
 0x719   : > { %v1566_v25 = vrot.slane %v1558_v10, %v4615_v30  ;;  %v1573_v59 = vrot.slane %v1559_v12, %v4615_v30  ;;  %v1803_v10 = vsub.s32 3, %v4563_v61 }
 0x71b   : > { %v1804_v12 = vrot.slane %v4571_v63, %v1803_v10 }
 0x739   : > { %v1554_v23 = vpop.f32.mrb[16].mxu1 }
 0x73a   : > { %v1574_v49 = vcombine.low %v1408_v9, %v1554_v23  ;;  %v1575_v50 = vcombine.high %v1408_v9, %v1554_v23  ;;  %v4026_v52 = vpop.f32.mrb[17].mxu1 }
 0x73c   : > { %v1582_v26 = vrot.slane %v1574_v49, %v4615_v30  ;;  %v1589_v27 = vrot.slane %v1575_v50, %v4615_v30  ;;  %v357_v50 = vld [vmem:[%s5131_s3 + $0x8] sm:$0xff] }
 0x73e   : > { %v1590_v28 = vcombine.low %v1566_v25, %v1582_v26  ;;  %v1591_v29 = vcombine.high %v1566_v25, %v1582_v26  ;;  %v1606_v31 = vcombine.low %v1573_v59, %v1589_v27  ;;  %v1607_v32 = vcombine.high %v1573_v59, %v1589_v27  ;;  %v363_v25 = vld [vmem:[%s5131_s3 + $0x38] sm:$0xff] }
 0x73f   : > { %v4207_v59 = vpack.c.bf16 %v363_v25, %v361_v24  ;;  %v4287_v27 = vpack.i.bf16 %v363_v25, %v361_v24 }
 0x740   : > { %v1598_v34 = vrot.slane %v1590_v28, %v4618_v33  ;;  %v1605_v35 = vrot.slane %v1591_v29, %v4618_v33  ;;  %v1614_v36 = vrot.slane %v1606_v31, %v4618_v33  ;;  %v1621_v37 = vrot.slane %v1607_v32, %v4618_v33 }
 0x741   : > { %v1821_v32 = vsub.s32 4, %v4563_v61 }
 0x742   : > { %v1626_v38 = vcombine.low %v1598_v34, %v1605_v35  ;;  %v3849_v39 = vcombine.high %v1598_v34, %v1605_v35  ;;  %v1642_v40 = vcombine.low %v1614_v36, %v1621_v37  ;;  %v3850_v42 = vcombine.high %v1614_v36, %v1621_v37 }
 0x743   : > { %v1826_v34 = vsub.s32 5, %v4563_v61  ;;  %v1822_v35 = vrot.slane %v4571_v63, %v1821_v32 }
 0x744   : > { %v1633_v43 = vrot.slane %v1626_v38, %v4615_v30  ;;  %v1641_v14 = vrot.slane %v3849_v39, %v4615_v30  ;;  %v1649_v15 = vrot.slane %v1642_v40, %v4615_v30  ;;  %v1657_v46 = vrot.slane %v3850_v42, %v4615_v30 }
 0x745   : > { %v1827_v38 = vrot.slane %v4571_v63, %v1826_v34 }
 0x746   : > { %v1659_v47 = vcombine.high %v1633_v43, %v1641_v14  ;;  %v1675_v48 = vcombine.high %v1649_v15, %v1657_v46  ;;  %v1658_v53 = vcombine.low %v1633_v43, %v1641_v14  ;;  %v1674_v57 = vcombine.low %v1649_v15, %v1657_v46 }
 0x748   : > { %v1673_v58 = vrot.slane %v1659_v47, %v4618_v33  ;;  %v1689_v60 = vrot.slane %v1675_v48, %v4618_v33  ;;  %v1666_v44 = vrot.slane %v1658_v53, %v4618_v33  ;;  %v1682_v1 = vrot.slane %v1674_v57, %v4618_v33 }
 0x74a   : > { %v1692_v2 = vcombine.low %v1673_v58, %v1689_v60  ;;  %v1691_v11 = vcombine.high %v1666_v44, %v1682_v1  ;;  %v1693_v4 = vcombine.high %v1673_v58, %v1689_v60  ;;  %v1690_v5 = vcombine.low %v1666_v44, %v1682_v1 }
 0x74b   : > { %v1831_v58 = vsub.s32 6, %v4563_v61 }
 0x74c   : > { %1699 = vrot.lane.b32.xlu0 %v1692_v2, %s4378_s28  ;;  %1695 = vrot.lane.b32.xlu1 %v1691_v11, %s4379_s29 }
 0x74d   : > { %v1832_v60 = vrot.slane %v4571_v63, %v1831_v58 }
 0x750   : > { %1703 = vrot.lane.b32.xlu1 %v1693_v4, %s4380_s30 }
 0x7be   : > { %v1696_v45 = vpop.permute.xlu1 %1695  ;;  %v1700_v6 = vpop.permute.xlu0 %1699 }
 0x7bf   : > { %v1706_v7 = vsel %vm917_vm3, %v1690_v5, %v1696_v45 }
 0x7c0   : > { %v1708_v56 = vsel %vm1707_vm5, %v1706_v7, %v1700_v6  ;;  %v2008_v7 = vsub.s32 7, %v4563_v61  ;;  %v3662_v61 = vld [vmem:[%s5133_s5] sm:$0xff] }
 0x7c2   : > { %v1704_v9 = vpop.permute.xlu1 %1703 }
 0x7c3   : > { %v1710_v16 = vsel %vm1709_vm6, %v1708_v56, %v1704_v9  ;;  %v2009_v9 = vrot.slane %v4571_v63, %v2008_v7  ;;  %v4844_v63 = vld [vmem:[%s5131_s3 + $0x40] sm:$0xff] }
 0x7c4   : > { %4036 = vmatmul.mubr.msk.f32.vlgmr.msra.gmra.mrb[18].mxu1 %vm365_vm1, %v1710_v16 }
 0x7c5   : > { %4057 = vmatprep.mubr.msk.f32.mxu1 %vm4367_vm2, %v4368_v55 }
 0x897   : > { %v1796_v17 = vpop.f32.mrb[18].mxu1 }
 0x898   : > { %v1800_v18 = vadd.f32 %v1796_v17, %v4524_v41  ;;  %v4037_v19 = vpop.f32.mrb[19].mxu1  ;;  %v359_v41 = vld [vmem:[%s5131_s3 + $0x18] sm:$0xff] }
 0x899   : > { %v4204_v52 = vpack.c.bf16 %v359_v41, %v357_v50  ;;  %v4282_v26 = vpack.i.bf16 %v359_v41, %v357_v50  ;;  %v4861_v50 = vld [vmem:[%s5131_s3 + $0x70] sm:$0xff] }
 0x89a   : > { %v4778_v20 = vadd.f32 %v1804_v12, %v1800_v18 }
 0x89b   : > { %4205 = vmatpush3.bf16.msra.mxu0 %v4204_v52 }
 0x89c   : > { %v1806_v51 = vsel %vm365_vm1, %v4778_v20, 0.0  ;;  %4206 = vmatprep.subr.bf16.mxu0 %v4366_v3 }
 0x89d   : > { %1807 = vadd.xlane.f32.xlu0 %v1806_v51 }
 0x89f   : > { %4208 = vmatpush3.bf16.msra.mxu0 %v4207_v59  ;;  %v4870_v59 = vld [vmem:[%s5132_s4 + $0x8] sm:$0xff] }
 0x8a0   : > { %4217 = vmatprep.subr.bf16.mxu0 %v4366_v3  ;;  %v3660_v46 = vrot.slane %v4870_v59, %v2008_v7  ;;  %v3663_v7 = vld [vmem:[%s5133_s5 + $0x8] sm:$0xff] }
 0x8b3   : > { %4283 = vrot.lane.b32.xlu0 %v4282_v26, %s4376_s26  ;;  %v2038_v26 = vrot.slane %v4870_v59, %v4566_v62 }
 0x92a   : > { %v1808_v54 = vpop.xlane.xlu0 %1807 }
 0x92b   : > { %v1809_v21 = vmul.f32 0.03125, %v1808_v54 }
 0x92d   : > { %v1810_v22 = vsub.f32 %v4778_v20, %v1809_v21 }
 0x92e   : > { %v4284_v42 = vpop.permute.xlu0 %4283 }
 0x92f   : > { %v1811_v23 = vmul.f32 %v1810_v22, %v1810_v22  ;;  %v4286_v43 = vunpack.i.h.bf16 %v4284_v42  ;;  %v4285_v14 = vunpack.i.l.bf16 %v4284_v42 }
 0x931   : > { %v1812_v49 = vsel %vm365_vm1, %v1811_v23, 0.0  ;;  %v4210_v15 = vpack.c.bf16 %v4286_v43, %v4285_v14 }
 0x932   : > { %1813 = vadd.xlane.f32.xlu1 %v1812_v49  ;;  %v4856_v49 = vld [vmem:[%s5131_s3 + $0x60] sm:$0xff] }
 0x933   : > { %4212 = vmatpush3.bf16.xpose.msk.msra.mxu1 %vm4813_vm7, %v4210_v15  ;;  %v4221_v41 = vpack.c.bf16 %v4861_v50, %v4856_v49 }
 0x934   : > { %4213 = vmatprep.subr.bf16.mxu1 %v4366_v3 }
 0x943   : > { %4288 = vrot.lane.b32.xlu1 %v4287_v27, %s4376_s26 }
 0x9bf   : > { %v1814_v28 = vpop.xlane.xlu1 %1813 }
 0x9c0   : > { %v1815_v29 = vmul.f32 0.03125, %v1814_v28 }
 0x9c2   : > { %v1816_v31 = vadd.f32 1e-06, %v1815_v29  ;;  %v2043_v29 = vrot.slane %v4870_v59, %v4574_v0 }
 0x9c3   : > { %v4289_v47 = vpop.permute.xlu1 %4288 }
 0x9c4   : > { %4330 = vrsqrt.f32 %v1816_v31  ;;  %v4291_v48 = vunpack.i.h.bf16 %v4289_v47  ;;  %v4290_v53 = vunpack.i.l.bf16 %v4289_v47 }
 0x9c6   : > { %v4214_v57 = vpack.c.bf16 %v4291_v48, %v4290_v53 }
 0x9c8   : > { %4216 = vmatpush3.bf16.xpose.msk.msra.mxu1 %vm4813_vm7, %v4214_v57 }
 0x9c9   : > { %4071 = vmatprep.subr.mxu1 %v4368_v55 }
 0x9ce   : > { %v4331_v36 = vpop.eup %4330 }
 0x9cf   : > { %v1818_v37 = vmul.f32 %v4331_v36, %v1810_v22  ;;  %v2048_v36 = vrot.slane %v4870_v59, %v4584_v8 }
 0x9d1   : > { %v1823_v39 = vmul.f32 %v1822_v35, %v1818_v37 }
 0x9d3   : > { %v1828_v40 = vadd.f32 %v1827_v38, %v1823_v39 }
 0x9d5   : > { %4047 = vmatmul.mubr.msk.f32.vlgmr.msra.gmra.mrb[2].mxu0 %vm365_vm1, %v1828_v40 }
 0x9d6   : > { %4068 = vmatprep.mubr.msk.f32.mxu0 %vm4367_vm2, %v4368_v55 }
 0xaa8   : > { %v1902_v44 = vpop.f32.mrb[2].mxu0 }
 0xaa9   : > { %v1903_v1 = vadd.f32 %v1902_v44, %v1832_v60  ;;  %v4048_v2 = vpop.f32.mrb[3].mxu0 }
 0xaab   : > { %v1908_v11 = vmul.f32 0.70710677, %v1903_v1  ;;  %v1906_v5 = vmul.f32 0.5, %v1903_v1 }
 0xaad   : > { %4332 = verf.f32 %v1908_v11 }
 0xab7   : > { %v4333_v4 = vpop.eup %4332 }
 0xab8   : > { %v1910_v45 = vadd.f32 1.0, %v4333_v4 }
 0xaba   : > { %v1911_v6 = vmul.f32 %v1910_v45, %v1906_v5 }
 0xabc   : > { %4058 = vmatmul.mubr.msk.f32.vlgmr.msra.gmra.mrb[20].mxu1 %vm276_vm0, %v1911_v6 }
 0xabd   : > { %4073 = vmatprep.mubr.msk.f32.mxu1 %vm4367_vm2, %v4368_v55 }
 0xb8f   : > { %v2001_v56 = vpop.f32.mrb[20].mxu1 }
 0xb90   : > { %v2005_v16 = vadd.f32 %v2001_v56, %v4778_v20  ;;  %v4059_v12 = vpop.f32.mrb[21].mxu1  ;;  %v4849_v20 = vld [vmem:[%s5131_s3 + $0x50] sm:$0xff] }
 0xb91   : > { %v4218_v23 = vpack.c.bf16 %v4849_v20, %v4844_v63 }
 0xb92   : > { %v4835_v17 = vadd.f32 %v2009_v9, %v2005_v16 }
 0xb93   : > { %4219 = vmatpush3.bf16.msra.mxu0 %v4218_v23 }
 0xb94   : > { %v2022_v18 = vsel %vm365_vm1, %v4835_v17, 0.0  ;;  %4220 = vmatprep.subr.bf16.mxu0 %v4366_v3 }
 0xb95   : > { %2023 = vadd.xlane.f32.xlu0 %v2022_v18 }
 0xb97   : > { %4222 = vmatpush3.bf16.msra.mxu0 %v4221_v41 }
 0xb98   : > { %4081 = vmatprep.subr.mxu0 %v4368_v55 }
 0xc22   : > { %v2024_v19 = vpop.xlane.xlu0 %2023 }
 0xc23   : > { %v2025_v51 = vmul.f32 0.03125, %v2024_v19 }
 0xc25   : > { %v2026_v54 = vsub.f32 %v4835_v17, %v2025_v51 }
 0xc27   : > { %v2027_v21 = vmul.f32 %v2026_v54, %v2026_v54 }
 0xc29   : > { %v2028_v22 = vsel %vm365_vm1, %v2027_v21, 0.0 }
 0xc2a   : > { %2029 = vadd.xlane.f32.xlu1 %v2028_v22 }
 0xcb7   : > { %v2030_v52 = vpop.xlane.xlu1 %2029 }
 0xcb8   : > { %v2031_v24 = vmul.f32 0.03125, %v2030_v52 }
 0xcba   : > { %v2032_v25 = vadd.f32 1e-06, %v2031_v24 }
 0xcbc   : > { %4334 = vrsqrt.f32 %v2032_v25 }
 0xcc6   : > { %v4335_v27 = vpop.eup %4334 }
 0xcc7   : > { %v2034_v28 = vmul.f32 %v4335_v27, %v2026_v54 }
 0xcc9   : > { %v2039_v31 = vmul.f32 %v2038_v26, %v2034_v28 }
 0xccb   : > { %v2044_v35 = vadd.f32 %v2043_v29, %v2039_v31 }
 0xccd   : > { %4069 = vmatmul.mubr.msk.f32.vlgmr.msra.gmra.mrb[4].mxu0 %vm365_vm1, %v2044_v35 }
 0xcce   : > { %4083 = vmatprep.mubr.msk.f32.mxu0 %vm4367_vm2, %v4368_v55 }
 0xda0   : > { %v2118_v37 = vpop.f32.mrb[4].mxu0 }
 0xda1   : > { %v4881_v38 = vadd.f32 %v2118_v37, %v2048_v36  ;;  %v4070_v39 = vpop.f32.mrb[5].mxu0 }
 0xda3   : > { %2272 = vrot.lane.b32.xlu1 %v4881_v38, %s4371_s24  ;;  %2270 = vrot.lane.b32.xlu0 %v4881_v38, %s4370_s23  ;;  %v2122_v40 = vmul.f32 0.35355338, %v4881_v38 }
 0xda7   : > { %2276 = vrot.lane.b32.xlu1 %v4881_v38, %s4372_s25  ;;  %2274 = vrot.lane.b32.xlu0 %v4881_v38, %s4369_s20 }
 0xdab   : > { %2124 = vrot.lane.b32.xlu1 %v2122_v40, %s4370_s23 }
 0xe15   : > { %v4893_v42 = vpop.permute.xlu1 %2272  ;;  %v4895_v43 = vpop.permute.xlu0 %2270 }
 0xe16   : > { %2278 = vrot.lane.b32.xlu0 %v4895_v43, %s4372_s25  ;;  %2280 = vrot.lane.b32.xlu1 %v4893_v42, %s4372_s25 }
 0xe19   : > { %v4901_v14 = vpop.permute.xlu0 %2274  ;;  %v2277_v15 = vpop.permute.xlu1 %2276 }
 0xe1a   : > { %2282 = vrot.lane.b32.xlu0 %v4901_v14, %s4372_s25  ;;  %2130 = vrot.lane.b32.xlu1 %v2122_v40, %s4369_s20 }
 0xe1d   : > { %v2125_v47 = vpop.permute.xlu1 %2124 }
 0xe1e   : > { %2127 = vrot.lane.b32.xlu0 %v2122_v40, %s4371_s24 }
 0xe88   : > { %v2279_v48 = vpop.permute.xlu0 %2278  ;;  %v2281_v53 = vpop.permute.xlu1 %2280 }
 0xe89   : > { %v2288_v57 = vcombine.low %v2277_v15, %v2281_v53  ;;  %v2289_v60 = vcombine.high %v2277_v15, %v2281_v53 }
 0xe8b   : > { %v2296_v4 = vrot.slane %v2288_v57, %v4615_v30  ;;  %v2303_v5 = vrot.slane %v2289_v60, %v4615_v30 }
 0xe8c   : > { %v2283_v44 = vpop.permute.xlu0 %2282  ;;  %v2131_v11 = vpop.permute.xlu1 %2130 }
 0xe8d   : > { %v2304_v1 = vcombine.low %v2279_v48, %v2283_v44  ;;  %v2305_v2 = vcombine.high %v2279_v48, %v2283_v44  ;;  %v2149_v9 = vcombine.low %v2125_v47, %v2131_v11  ;;  %v2150_v56 = vcombine.high %v2125_v47, %v2131_v11 }
 0xe8f   : > { %v2312_v45 = vrot.slane %v2304_v1, %v4615_v30  ;;  %v2319_v6 = vrot.slane %v2305_v2, %v4615_v30  ;;  %v2157_v24 = vrot.slane %v2149_v9, %v4615_v30  ;;  %v2164_v25 = vrot.slane %v2150_v56, %v4615_v30 }
 0xe90   : > { %v2128_v16 = vpop.permute.xlu0 %2127 }
 0xe91   : > { %v2320_v12 = vcombine.low %v2296_v4, %v2312_v45  ;;  %v2321_v18 = vcombine.high %v2296_v4, %v2312_v45  ;;  %v2336_v19 = vcombine.low %v2303_v5, %v2319_v6  ;;  %v2337_v51 = vcombine.high %v2303_v5, %v2319_v6 }
 0xe92   : > { %v2133_v54 = vcombine.low %v2122_v40, %v2128_v16  ;;  %v2134_v21 = vcombine.high %v2122_v40, %v2128_v16 }
 0xe93   : > { %v2328_v22 = vrot.slane %v2320_v12, %v4618_v33  ;;  %v2335_v23 = vrot.slane %v2321_v18, %v4618_v33  ;;  %v2344_v41 = vrot.slane %v2336_v19, %v4618_v33  ;;  %v2351_v52 = vrot.slane %v2337_v51, %v4618_v33 }
 0xe94   : > { %v2141_v26 = vrot.slane %v2133_v54, %v4615_v30  ;;  %v2148_v27 = vrot.slane %v2134_v21, %v4615_v30 }
 0xe95   : > { %v2356_v28 = vcombine.low %v2328_v22, %v2335_v23  ;;  %v3870_v29 = vcombine.high %v2328_v22, %v2335_v23  ;;  %v2372_v31 = vcombine.low %v2344_v41, %v2351_v52  ;;  %v3871_v35 = vcombine.high %v2344_v41, %v2351_v52 }
 0xe96   : > { %v2165_v36 = vcombine.low %v2141_v26, %v2157_v24  ;;  %v2166_v37 = vcombine.high %v2141_v26, %v2157_v24  ;;  %v2181_v39 = vcombine.low %v2148_v27, %v2164_v25  ;;  %v2182_v40 = vcombine.high %v2148_v27, %v2164_v25 }
 0xe97   : > { %v2363_v15 = vrot.slane %v2356_v28, %v4615_v30  ;;  %v2371_v47 = vrot.slane %v3870_v29, %v4615_v30  ;;  %v2379_v48 = vrot.slane %v2372_v31, %v4615_v30  ;;  %v2387_v53 = vrot.slane %v3871_v35, %v4615_v30 }
 0xe98   : > { %v2173_v57 = vrot.slane %v2165_v36, %v4618_v33  ;;  %v2180_v60 = vrot.slane %v2166_v37, %v4618_v33  ;;  %v2189_v44 = vrot.slane %v2181_v39, %v4618_v33  ;;  %v2196_v1 = vrot.slane %v2182_v40, %v4618_v33 }
 0xe99   : > { %v2388_v2 = vcombine.low %v2363_v15, %v2371_v47  ;;  %v2389_v11 = vcombine.high %v2363_v15, %v2371_v47  ;;  %v2404_v4 = vcombine.low %v2379_v48, %v2387_v53  ;;  %v2405_v5 = vcombine.high %v2379_v48, %v2387_v53 }
 0xe9a   : > { %v2201_v45 = vcombine.low %v2173_v57, %v2180_v60  ;;  %v3868_v6 = vcombine.high %v2173_v57, %v2180_v60  ;;  %v2217_v9 = vcombine.low %v2189_v44, %v2196_v1  ;;  %v3869_v56 = vcombine.high %v2189_v44, %v2196_v1 }
 0xe9b   : > { %v2396_v16 = vrot.slane %v2388_v2, %v4618_v33  ;;  %v2412_v12 = vrot.slane %v2404_v4, %v4618_v33  ;;  %v2403_v18 = vrot.slane %v2389_v11, %v4618_v33  ;;  %v2419_v19 = vrot.slane %v2405_v5, %v4618_v33 }
 0xe9c   : > { %v2208_v51 = vrot.slane %v2201_v45, %v4615_v30  ;;  %v2216_v54 = vrot.slane %v3868_v6, %v4615_v30  ;;  %v2224_v21 = vrot.slane %v2217_v9, %v4615_v30  ;;  %v2232_v22 = vrot.slane %v3869_v56, %v4615_v30 }
 0xe9d   : > { %v2420_v23 = vcombine.low %v2396_v16, %v2412_v12  ;;  %v2422_v41 = vcombine.low %v2403_v18, %v2419_v19  ;;  %v2421_v37 = vcombine.high %v2396_v16, %v2412_v12  ;;  %v2423_v40 = vcombine.high %v2403_v18, %v2419_v19 }
 0xe9e   : > { %v2233_v52 = vcombine.low %v2208_v51, %v2216_v54  ;;  %v2234_v24 = vcombine.high %v2208_v51, %v2216_v54  ;;  %v2249_v25 = vcombine.low %v2224_v21, %v2232_v22  ;;  %v2250_v26 = vcombine.high %v2224_v21, %v2232_v22 }
 0xe9f   : > { %4072 = vmatpush3.xpose.msk.msra.mxu1 %vm917_vm3, %v2420_v23  ;;  %4082 = vmatpush3.xpose.msk.msra.mxu0 %vm917_vm3, %v2422_v41 }
 0xea0   : > { %4076 = vmatprep.subr.mxu1 %v4368_v55  ;;  %v2241_v27 = vrot.slane %v2233_v52, %v4618_v33  ;;  %v2257_v28 = vrot.slane %v2249_v25, %v4618_v33  ;;  %v2248_v29 = vrot.slane %v2234_v24, %v4618_v33  ;;  %v2264_v31 = vrot.slane %v2250_v26, %v4618_v33 }
 0xea1   : > { %4091 = vmatprep.subr.mxu0 %v4368_v55 }
 0xea2   : > { %v2265_v35 = vcombine.low %v2241_v27, %v2257_v28  ;;  %v2267_v36 = vcombine.low %v2248_v29, %v2264_v31  ;;  %v2266_v39 = vcombine.high %v2241_v27, %v2257_v28  ;;  %v2268_v15 = vcombine.high %v2248_v29, %v2264_v31 }
 0xea4   : > { %4074 = vmatmul.mubr.msk.f32.vlgmr.msra.gmra.mrb[22].mxu1 %vm917_vm3, %v2265_v35  ;;  %4084 = vmatmul.mubr.msk.f32.vlgmr.msra.gmra.mrb[6].mxu0 %vm917_vm3, %v2267_v36 }
 0xea5   : > { %4077 = vmatpush3.xpose.msk.msra.mxu1 %vm917_vm3, %v2421_v37  ;;  %4078 = vmatprep.mubr.msk.f32.mxu1 %vm4367_vm2, %v4368_v55 }
 0xea6   : > { %4086 = vmatprep.subr.mxu1 %v4368_v55  ;;  %4093 = vmatprep.mubr.msk.f32.mxu0 %vm4367_vm2, %v4368_v55 }
 0xea8   : > { %4079 = vmatmul.mubr.msk.f32.vlgmr.msra.gmra.mrb[24].mxu1 %vm917_vm3, %v2266_v39 }
 0xea9   : > { %4087 = vmatpush3.xpose.msk.msra.mxu1 %vm917_vm3, %v2423_v40  ;;  %4088 = vmatprep.mubr.msk.f32.mxu1 %vm4367_vm2, %v4368_v55 }
 0xeaa   : > { %4096 = vmatprep.subr.mxu1 %v4368_v55 }
 0xeac   : > { %4089 = vmatmul.mubr.msk.f32.vlgmr.msra.gmra.mrb[26].mxu1 %vm917_vm3, %v2268_v15 }
 0xead   : > { %4098 = vmatprep.mubr.msk.f32.mxu1 %vm4367_vm2, %v4368_v55 }
 0xf77   : > { %v2644_v47 = vpop.f32.mrb[22].mxu1  ;;  %v2796_v48 = vpop.f32.mrb[6].mxu0 }
 0xf78   : > { %v2645_v53 = vadd.f32 %v2644_v47, %v4673_v13  ;;  %v4075_v57 = vpop.f32.mrb[23].mxu1  ;;  %v4085_v60 = vpop.f32.mrb[7].mxu0  ;;  %v2797_v44 = vadd.f32 %v2796_v48, %v4673_v13 }
 0xf7a   : > { %v2876_v1 = vsel %vm917_vm3, %v2645_v53, -inf  ;;  %v2882_v45 = vsel %vm917_vm3, %v2797_v44, -inf }
 0xf7b   : > { %2877 = vmax.xlane.f32.xlu0 %v2876_v1  ;;  %v2720_v2 = vpop.f32.mrb[24].mxu1 }
 0xf7c   : > { %v2721_v11 = vadd.f32 %v2720_v2, %v4673_v13  ;;  %v4080_v4 = vpop.f32.mrb[25].mxu1 }
 0xf7e   : > { %v2879_v5 = vsel %vm917_vm3, %v2721_v11, -inf }
 0xf7f   : > { %2880 = vmax.xlane.f32.xlu1 %v2879_v5  ;;  %v2872_v6 = vpop.f32.mrb[26].mxu1  ;;  %2883 = vmax.xlane.f32.xlu0 %v2882_v45 }
 0xf80   : > { %v2873_v9 = vadd.f32 %v2872_v6, %v4673_v13  ;;  %v4090_v56 = vpop.f32.mrb[27].mxu1 }
 0xf82   : > { %v2885_v16 = vsel %vm917_vm3, %v2873_v9, -inf }
 0xf83   : > { %2886 = vmax.xlane.f32.xlu0 %v2885_v16 }
 0xf90   : > { %2424 = vrot.lane.b32.xlu1 %v4881_v38, %s4376_s26 }
0x1008   : > { %v2878_v12 = vpop.xlane.xlu0 %2877 }
0x1009   : > { %v2888_v18 = vsub.f32 %v2645_v53, %v2878_v12 }
0x100b   : > { %v2892_v19 = vmul.f32 1.442695, %v2888_v18 }
0x100c   : > { %v2881_v51 = vpop.xlane.xlu1 %2880  ;;  %v2884_v54 = vpop.xlane.xlu0 %2883 }
0x100d   : > { %4336 = vpow2.f32 %v2892_v19  ;;  %v2889_v21 = vsub.f32 %v2721_v11, %v2881_v51  ;;  %v2890_v22 = vsub.f32 %v2797_v44, %v2884_v54 }
0x100f   : > { %v2894_v23 = vmul.f32 1.442695, %v2889_v21  ;;  %v2896_v41 = vmul.f32 1.442695, %v2890_v22 }
0x1010   : > { %v2887_v52 = vpop.xlane.xlu0 %2886  ;;  %v2425_v36 = vpop.permute.xlu1 %2424 }
0x1011   : > { %4338 = vpow2.f32 %v2894_v23  ;;  %v2891_v13 = vsub.f32 %v2873_v9, %v2887_v52 }
0x1012   : > { %4340 = vpow2.f32 %v2896_v41 }
0x1013   : > { %v2898_v24 = vmul.f32 1.442695, %v2891_v13 }
0x1015   : > { %4342 = vpow2.f32 %v2898_v24 }
0x1017   : > { %v4969_v25 = vpop.eup %4336 }
0x1018   : > { %v2900_v38 = vsel %vm917_vm3, %v4969_v25, 0.0 }
0x1019   : > { %2901 = vadd.xlane.f32.xlu1 %v2900_v38 }
0x101b   : > { %v4339_v26 = vpop.eup %4338 }
0x101c   : > { %v4973_v27 = vpop.eup %4340  ;;  %v2903_v28 = vsel %vm917_vm3, %v4339_v26, 0.0 }
0x101d   : > { %2904 = vadd.xlane.f32.xlu0 %v2903_v28  ;;  %v2906_v29 = vsel %vm917_vm3, %v4973_v27, 0.0 }
0x101e   : > { %2907 = vadd.xlane.f32.xlu1 %v2906_v29 }
0x101f   : > { %v4978_v31 = vpop.eup %4342 }
0x1020   : > { %v2909_v35 = vsel %vm917_vm3, %v4978_v31, 0.0 }
0x1021   : > { %2910 = vadd.xlane.f32.xlu0 %v2909_v35 }
0x102f   : > { %2428 = vrot.lane.b32.xlu1 %v4893_v42, %s4376_s26 }
0x1033   : > { %2430 = vrot.lane.b32.xlu1 %v4901_v14, %s4376_s26 }
0x1037   : > { %2426 = vrot.lane.b32.xlu0 %v4895_v43, %s4376_s26 }
0x10a6   : > { %v2902_v37 = vpop.xlane.xlu1 %2901 }
0x10a7   : > { %4344 = vrcp.f32 %v2902_v37 }
0x10aa   : > { %v2905_v39 = vpop.xlane.xlu0 %2904 }
0x10ab   : > { %v2908_v40 = vpop.xlane.xlu1 %2907  ;;  %4346 = vrcp.f32 %v2905_v39 }
0x10ac   : > { %4348 = vrcp.f32 %v2908_v40 }
0x10ae   : > { %v2911_v15 = vpop.xlane.xlu0 %2910 }
0x10af   : > { %v2429_v47 = vpop.permute.xlu1 %2428  ;;  %4350 = vrcp.f32 %v2911_v15 }
0x10b0   : > { %v2436_v48 = vcombine.low %v2425_v36, %v2429_v47  ;;  %v2437_v53 = vcombine.high %v2425_v36, %v2429_v47 }
0x10b1   : > { %v4345_v13 = vpop.eup %4344 }
0x10b2   : > { %v2427_v57 = vpop.permute.xlu0 %2426  ;;  %v2444_v42 = vrot.slane %v2436_v48, %v4615_v30  ;;  %v2451_v2 = vrot.slane %v2437_v53, %v4615_v30  ;;  %v2913_v47 = vmul.f32 %v4345_v13, %v4969_v25  ;;  %v4292_v25 = vpack.i.bf16 %v4849_v20, %v4844_v63 }
0x10b3   : > { %v2431_v60 = vpop.permute.xlu1 %2430 }
0x10b4   : > { %v2452_v44 = vcombine.low %v2427_v57, %v2431_v60  ;;  %v2453_v1 = vcombine.high %v2427_v57, %v2431_v60  ;;  %4293 = vrot.lane.b32.xlu0 %v4292_v25, %s4377_s27 }
0x10b5   : > { %v4347_v29 = vpop.eup %4346 }
0x10b6   : > { %v2460_v14 = vrot.slane %v2452_v44, %v4615_v30  ;;  %v2467_v43 = vrot.slane %v2453_v1, %v4615_v30  ;;  %v4349_v15 = vpop.eup %4348  ;;  %v2915_v48 = vmul.f32 %v4347_v29, %v4339_v26  ;;  %v4297_v26 = vpack.i.bf16 %v4861_v50, %v4856_v49 }
0x10b7   : > { %v2917_v44 = vmul.f32 %v4349_v15, %v4973_v27 }
0x10b8   : > { %v2468_v11 = vcombine.low %v2444_v42, %v2460_v14  ;;  %v2469_v4 = vcombine.high %v2444_v42, %v2460_v14  ;;  %v2484_v5 = vcombine.low %v2451_v2, %v2467_v43  ;;  %v2485_v45 = vcombine.high %v2451_v2, %v2467_v43  ;;  %4298 = vrot.lane.b32.xlu1 %v4297_v26, %s4377_s27 }
0x10b9   : > { %v4351_v53 = vpop.eup %4350 }
0x10ba   : > { %v2476_v6 = vrot.slane %v2468_v11, %v4618_v33  ;;  %v2483_v9 = vrot.slane %v2469_v4, %v4618_v33  ;;  %v2492_v56 = vrot.slane %v2484_v5, %v4618_v33  ;;  %v2499_v16 = vrot.slane %v2485_v45, %v4618_v33 }
0x10bb   : > { %v2919_v1 = vmul.f32 %v4351_v53, %v4978_v31 }
0x10bc   : > { %v2504_v12 = vcombine.low %v2476_v6, %v2483_v9  ;;  %v3872_v18 = vcombine.high %v2476_v6, %v2483_v9  ;;  %v2520_v19 = vcombine.low %v2492_v56, %v2499_v16  ;;  %v3873_v51 = vcombine.high %v2492_v56, %v2499_v16 }
0x10be   : > { %v2511_v54 = vrot.slane %v2504_v12, %v4615_v30  ;;  %v2519_v21 = vrot.slane %v3872_v18, %v4615_v30  ;;  %v2527_v22 = vrot.slane %v2520_v19, %v4615_v30  ;;  %v2535_v23 = vrot.slane %v3873_v51, %v4615_v30 }
0x10c0   : > { %v2536_v41 = vcombine.low %v2511_v54, %v2519_v21  ;;  %v2537_v52 = vcombine.high %v2511_v54, %v2519_v21  ;;  %v2552_v24 = vcombine.low %v2527_v22, %v2535_v23  ;;  %v2553_v38 = vcombine.high %v2527_v22, %v2535_v23 }
0x10c2   : > { %v2544_v28 = vrot.slane %v2536_v41, %v4618_v33  ;;  %v2560_v35 = vrot.slane %v2552_v24, %v4618_v33  ;;  %v2551_v36 = vrot.slane %v2537_v52, %v4618_v33  ;;  %v2567_v37 = vrot.slane %v2553_v38, %v4618_v33 }
0x10c4   : > { %v2568_v39 = vcombine.low %v2544_v28, %v2560_v35  ;;  %v2569_v40 = vcombine.high %v2544_v28, %v2560_v35  ;;  %v2570_v57 = vcombine.low %v2551_v36, %v2567_v37  ;;  %v2571_v60 = vcombine.high %v2551_v36, %v2567_v37 }
0x10c6   : > { %4092 = vmatpush3.msra.mxu0 %v2568_v39  ;;  %4097 = vmatpush3.msra.mxu1 %v2569_v40 }
0x10c7   : > { %4094 = vmatmul.mubr.msk.f32.vlgmr.msra.gmra.mrb[8].mxu0 %vm917_vm3, %v2913_v47  ;;  %4099 = vmatmul.mubr.msk.f32.vlgmr.msra.gmra.mrb[28].mxu1 %vm917_vm3, %v2915_v48 }
0x10c8   : > { %4101 = vmatprep.subr.mxu0 %v4368_v55  ;;  %4106 = vmatprep.subr.mxu1 %v4368_v55 }
0x10c9   : > { %4102 = vmatpush3.msra.mxu0 %v2570_v57  ;;  %4107 = vmatpush3.msra.mxu1 %v2571_v60 }
0x10ca   : > { %4103 = vmatprep.mubr.msk.f32.mxu0 %vm4367_vm2, %v4368_v55  ;;  %4108 = vmatprep.mubr.msk.f32.mxu1 %vm4367_vm2, %v4368_v55 }
0x10cb   : > { %4104 = vmatmul.mubr.msk.f32.vlgmr.msra.gmra.mrb[10].mxu0 %vm917_vm3, %v2917_v44  ;;  %4109 = vmatmul.mubr.msk.f32.vlgmr.msra.gmra.mrb[30].mxu1 %vm917_vm3, %v2919_v1 }
0x10cc   : > { %4223 = vmatprep.subr.bf16.mxu0 %v4366_v3  ;;  %4119 = vmatprep.mubr.msk.f32.mxu0 %vm4367_vm2, %v4368_v55 }
0x10cd   : > { %4229 = vmatprep.subr.bf16.mxu1 %v4366_v3  ;;  %4130 = vmatprep.mubr.msk.f32.mxu1 %vm4367_vm2, %v4368_v55 }
0x1126   : > { %v4294_v14 = vpop.permute.xlu0 %4293 }
0x1127   : > { %v4296_v43 = vunpack.i.h.bf16 %v4294_v14  ;;  %v4295_v11 = vunpack.i.l.bf16 %v4294_v14 }
0x1129   : > { %v4224_v12 = vpack.c.bf16 %v4296_v43, %v4295_v11 }
0x112a   : > { %v4299_v4 = vpop.permute.xlu1 %4298 }
0x112b   : > { %v4301_v6 = vunpack.i.h.bf16 %v4299_v4  ;;  %v4300_v9 = vunpack.i.l.bf16 %v4299_v4  ;;  %4225 = vmatpush3.bf16.msra.mxu0 %v4224_v12 }
0x112c   : > { %4226 = vmatprep.subr.bf16.mxu0 %v4366_v3 }
0x112d   : > { %v4227_v21 = vpack.c.bf16 %v4301_v6, %v4300_v9 }
0x112f   : > { %4228 = vmatpush3.bf16.msra.mxu0 %v4227_v21 }
0x1130   : > { %4235 = vmatprep.subr.bf16.mxu0 %v4366_v3 }
0x119a   : > { %v2989_v27 = vpop.f32.mrb[8].mxu0  ;;  %v3062_v31 = vpop.f32.mrb[28].mxu1 }
0x119b   : > { %v4095_v42 = vpop.f32.mrb[9].mxu0  ;;  %v4100_v2 = vpop.f32.mrb[29].mxu1 }
0x119e   : > { %v3135_v5 = vpop.f32.mrb[10].mxu0  ;;  %v3208_v45 = vpop.f32.mrb[30].mxu1 }
0x119f   : > { %v3212_v63 = vcombine.low %v2989_v27, %v3135_v5  ;;  %v3213_v20 = vcombine.high %v2989_v27, %v3135_v5  ;;  %v3228_v56 = vcombine.low %v3062_v31, %v3208_v45  ;;  %v3229_v49 = vcombine.high %v3062_v31, %v3208_v45  ;;  %v4105_v50 = vpop.f32.mrb[11].mxu0  ;;  %v4110_v16 = vpop.f32.mrb[31].mxu1 }
0x11a1   : > { %v3220_v18 = vrot.slane %v3212_v63, %v4615_v30  ;;  %v3227_v19 = vrot.slane %v3213_v20, %v4615_v30  ;;  %v3236_v51 = vrot.slane %v3228_v56, %v4615_v30  ;;  %v3243_v54 = vrot.slane %v3229_v49, %v4615_v30 }
0x11a3   : > { %v3244_v22 = vcombine.low %v3220_v18, %v3236_v51  ;;  %v3245_v23 = vcombine.high %v3220_v18, %v3236_v51  ;;  %v3260_v41 = vcombine.low %v3227_v19, %v3243_v54  ;;  %v3261_v52 = vcombine.high %v3227_v19, %v3243_v54  ;;  %v3859_v18 = vld [vmem:[%s5131_s3 + $0x48] sm:$0xff]  ;;  %v3865_v51 = vld [vmem:[%s5131_s3 + $0x78] sm:$0xff] }
0x11a4   : > { %v3863_v19 = vld [vmem:[%s5131_s3 + $0x68] sm:$0xff] }
0x11a5   : > { %v3252_v13 = vrot.slane %v3244_v22, %v4618_v33  ;;  %v3259_v24 = vrot.slane %v3245_v23, %v4618_v33  ;;  %v3268_v38 = vrot.slane %v3260_v41, %v4618_v33  ;;  %v3275_v28 = vrot.slane %v3261_v52, %v4618_v33 }
0x11a6   : > { %v4233_v54 = vpack.c.bf16 %v3865_v51, %v3863_v19  ;;  %v4307_v22 = vpack.i.bf16 %v3865_v51, %v3863_v19 }
0x11a7   : > { %v3280_v29 = vcombine.low %v3252_v13, %v3259_v24  ;;  %v3886_v35 = vcombine.high %v3252_v13, %v3259_v24  ;;  %v3296_v36 = vcombine.low %v3268_v38, %v3275_v28  ;;  %v3887_v37 = vcombine.high %v3268_v38, %v3275_v28 }
0x11a8   : > { %v3474_v13 = vrot.slane %v4870_v59, %v1821_v32  ;;  %v3479_v28 = vrot.slane %v4870_v59, %v1826_v34 }
0x11a9   : > { %v3287_v39 = vrot.slane %v3280_v29, %v4615_v30  ;;  %v3295_v40 = vrot.slane %v3886_v35, %v4615_v30  ;;  %v3303_v15 = vrot.slane %v3296_v36, %v4615_v30  ;;  %v3311_v47 = vrot.slane %v3887_v37, %v4615_v30 }
0x11ab   : > { %v3313_v48 = vcombine.high %v3287_v39, %v3295_v40  ;;  %v3329_v53 = vcombine.high %v3303_v15, %v3311_v47  ;;  %v3312_v57 = vcombine.low %v3287_v39, %v3295_v40  ;;  %v3328_v60 = vcombine.low %v3303_v15, %v3311_v47 }
0x11ad   : > { %v3327_v44 = vrot.slane %v3313_v48, %v4618_v33  ;;  %v3343_v1 = vrot.slane %v3329_v53, %v4618_v33  ;;  %v3320_v25 = vrot.slane %v3312_v57, %v4618_v33  ;;  %v3336_v26 = vrot.slane %v3328_v60, %v4618_v33 }
0x11ae   : > { %v3456_v33 = vrot.slane %v4870_v59, %v1803_v10  ;;  %v3861_v10 = vld [vmem:[%s5131_s3 + $0x58] sm:$0xff] }
0x11af   : > { %v3346_v27 = vcombine.low %v3327_v44, %v3343_v1  ;;  %v3345_v31 = vcombine.high %v3320_v25, %v3336_v26  ;;  %v3347_v42 = vcombine.high %v3327_v44, %v3343_v1  ;;  %v3344_v2 = vcombine.low %v3320_v25, %v3336_v26 }
0x11b0   : > { %v4302_v21 = vpack.i.bf16 %v3861_v10, %v3859_v18 }
0x11b1   : > { %3353 = vrot.lane.b32.xlu1 %v3346_v27, %s4378_s28  ;;  %3349 = vrot.lane.b32.xlu0 %v3345_v31, %s4379_s29 }
0x11b5   : > { %3357 = vrot.lane.b32.xlu0 %v3347_v42, %s4380_s30 }
0x1223   : > { %v3350_v30 = vpop.permute.xlu0 %3349  ;;  %v3354_v14 = vpop.permute.xlu1 %3353 }
0x1224   : > { %v3360_v43 = vsel %vm917_vm3, %v3344_v2, %v3350_v30 }
0x1225   : > { %v3361_v4 = vsel %vm1707_vm5, %v3360_v43, %v3354_v14 }
0x1227   : > { %v3358_v11 = vpop.permute.xlu0 %3357 }
0x1228   : > { %v3362_v5 = vsel %vm1709_vm6, %v3361_v4, %v3358_v11 }
0x1229   : > { %4120 = vmatmul.mubr.msk.f32.vlgmr.msra.gmra.mrb[12].mxu0 %vm365_vm1, %v3362_v5  ;;  %v3664_v5 = vld [vmem:[%s5133_s5 + $0x10] sm:$0xff] }
0x122a   : > { %4141 = vmatprep.mubr.msk.f32.mxu0 %vm4367_vm2, %v4368_v55 }
0x12fc   : > { %v3448_v45 = vpop.f32.mrb[12].mxu0 }
0x12fd   : > { %v3452_v6 = vadd.f32 %v3448_v45, %v4835_v17  ;;  %v4121_v9 = vpop.f32.mrb[13].mxu0  ;;  %v4230_v17 = vpack.c.bf16 %v3861_v10, %v3859_v18 }
0x12ff   : > { %v3457_v63 = vadd.f32 %v3456_v33, %v3452_v6  ;;  %4231 = vmatpush3.bf16.msra.mxu1 %v4230_v17  ;;  %v3665_v33 = vld [vmem:[%s5133_s5 + $0x18] sm:$0xff] }
0x1300   : > { %4232 = vmatprep.subr.bf16.mxu1 %v4366_v3  ;;  %v4247_v45 = vpack.c.bf16 %v3665_v33, %v3664_v5 }
0x1301   : > { %v3458_v20 = vsel %vm365_vm1, %v3457_v63, 0.0 }
0x1302   : > { %3459 = vadd.xlane.f32.xlu1 %v3458_v20  ;;  %v3666_v20 = vld [vmem:[%s5133_s5 + $0x20] sm:$0x7] }
0x1303   : > { %4234 = vmatpush3.bf16.msra.mxu1 %v4233_v54  ;;  %v3693_v18 = vrot.slane %v3666_v20, %v4584_v8 }
0x1304   : > { %4243 = vmatprep.subr.bf16.mxu1 %v4366_v3 }
0x1313   : > { %4308 = vrot.lane.b32.xlu1 %v4307_v22, %s4376_s26 }
0x138f   : > { %v3460_v56 = vpop.xlane.xlu1 %3459 }
0x1390   : > { %v3461_v49 = vmul.f32 0.03125, %v3460_v56 }
0x1392   : > { %v3462_v50 = vsub.f32 %v3457_v63, %v3461_v49 }
0x1393   : > { %v4309_v32 = vpop.permute.xlu1 %4308 }
0x1394   : > { %v3463_v16 = vmul.f32 %v3462_v50, %v3462_v50  ;;  %v4311_v15 = vunpack.i.h.bf16 %v4309_v32  ;;  %v4310_v47 = vunpack.i.l.bf16 %v4309_v32 }
0x1396   : > { %v3464_v12 = vsel %vm365_vm1, %v3463_v16, 0.0  ;;  %v4240_v34 = vpack.c.bf16 %v4311_v15, %v4310_v47 }
0x1397   : > { %3465 = vadd.xlane.f32.xlu0 %v3464_v12 }
0x13ad   : > { %4303 = vrot.lane.b32.xlu0 %v4302_v21, %s4376_s26 }
0x1424   : > { %v3466_v23 = vpop.xlane.xlu0 %3465 }
0x1425   : > { %v3467_v41 = vmul.f32 0.03125, %v3466_v23 }
0x1427   : > { %v3468_v52 = vadd.f32 1e-06, %v3467_v41 }
0x1428   : > { %v4304_v36 = vpop.permute.xlu0 %4303 }
0x1429   : > { %4352 = vrsqrt.f32 %v3468_v52  ;;  %v4306_v37 = vunpack.i.h.bf16 %v4304_v36  ;;  %v4305_v39 = vunpack.i.l.bf16 %v4304_v36 }
0x142b   : > { %v4236_v40 = vpack.c.bf16 %v4306_v37, %v4305_v39 }
0x142d   : > { %4238 = vmatpush3.bf16.xpose.msk.msra.mxu0 %vm4813_vm7, %v4236_v40 }
0x142e   : > { %4239 = vmatprep.subr.bf16.mxu0 %v4366_v3 }
0x1433   : > { %v4353_v24 = vpop.eup %4352 }
0x1434   : > { %v3470_v38 = vmul.f32 %v4353_v24, %v3462_v50  ;;  %v3688_v50 = vrot.slane %v3666_v20, %v4574_v0 }
0x1435   : > { %4242 = vmatpush3.bf16.xpose.msk.msra.mxu0 %vm4813_vm7, %v4240_v34 }
0x1436   : > { %v3475_v29 = vmul.f32 %v3474_v13, %v3470_v38 }
0x1438   : > { %v3480_v35 = vadd.f32 %v3479_v28, %v3475_v29 }
0x143a   : > { %4131 = vmatmul.mubr.msk.f32.vlgmr.msra.gmra.mrb[32].mxu1 %vm365_vm1, %v3480_v35 }
0x143b   : > { %4152 = vmatprep.mubr.msk.f32.mxu1 %vm4367_vm2, %v4368_v55  ;;  %v3484_v55 = vrot.slane %v4870_v59, %v1831_v58  ;;  %v4244_v59 = vpack.c.bf16 %v3663_v7, %v3662_v61 }
0x143d   : > { %4245 = vmatpush3.bf16.msra.mxu1 %v4244_v59 }
0x143e   : > { %4246 = vmatprep.subr.bf16.mxu1 %v4366_v3  ;;  %v3683_v3 = vrot.slane %v3666_v20, %v4566_v62 }
0x1441   : > { %4248 = vmatpush3.bf16.msra.mxu1 %v4247_v45 }
0x150d   : > { %v3554_v48 = vpop.f32.mrb[32].mxu1 }
0x150e   : > { %v3555_v53 = vadd.f32 %v3554_v48, %v3484_v55  ;;  %v4132_v57 = vpop.f32.mrb[33].mxu1 }
0x1510   : > { %v3559_v60 = vmul.f32 0.70710677, %v3555_v53  ;;  %v3558_v1 = vmul.f32 0.5, %v3555_v53 }
0x1512   : > { %4354 = verf.f32 %v3559_v60 }
0x151c   : > { %v4355_v44 = vpop.eup %4354 }
0x151d   : > { %v3561_v25 = vadd.f32 1.0, %v4355_v44 }
0x151f   : > { %v3562_v26 = vmul.f32 %v3561_v25, %v3558_v1 }
0x1521   : > { %4142 = vmatmul.mubr.msk.f32.vlgmr.msra.gmra.mrb[14].mxu0 %vm276_vm0, %v3562_v26 }
0x15f4   : > { %v3652_v27 = vpop.f32.mrb[14].mxu0 }
0x15f5   : > { %v3656_v31 = vadd.f32 %v3652_v27, %v3457_v63  ;;  %v4143_v42 = vpop.f32.mrb[15].mxu0 }
0x15f7   : > { %v3661_v2 = vadd.f32 %v3660_v46, %v3656_v31 }
0x15f9   : > { %v3667_v58 = vsel %vm365_vm1, %v3661_v2, 0.0 }
0x15fa   : > { %3668 = vadd.xlane.f32.xlu1 %v3667_v58 }
0x1687   : > { %v3669_v30 = vpop.xlane.xlu1 %3668 }
0x1688   : > { %v3670_v14 = vmul.f32 0.03125, %v3669_v30 }
0x168a   : > { %v3671_v43 = vsub.f32 %v3661_v2, %v3670_v14 }
0x168c   : > { %v3672_v11 = vmul.f32 %v3671_v43, %v3671_v43 }
0x168e   : > { %v3673_v4 = vsel %vm365_vm1, %v3672_v11, 0.0 }
0x168f   : > { %3674 = vadd.xlane.f32.xlu0 %v3673_v4 }
0x171c   : > { %v3675_v6 = vpop.xlane.xlu0 %3674 }
0x171d   : > { %v3676_v9 = vmul.f32 0.03125, %v3675_v6 }
0x171f   : > { %v3677_v63 = vadd.f32 1e-06, %v3676_v9 }
0x1721   : > { %4356 = vrsqrt.f32 %v3677_v63 }
0x172b   : > { %v4357_v56 = vpop.eup %4356 }
0x172c   : > { %v3679_v49 = vmul.f32 %v4357_v56, %v3671_v43 }
0x172e   : > { %v3684_v16 = vmul.f32 %v3683_v3, %v3679_v49 }
0x1730   : > { %v3689_v12 = vadd.f32 %v3688_v50, %v3684_v16 }
0x1732   : > { %4153 = vmatmul.mubr.msk.f32.vlgmr.msra.gmra.mrb[34].mxu1 %vm365_vm1, %v3689_v12 }
0x1805   : > { %v3763_v10 = vpop.f32.mrb[34].mxu1 }
0x1806   : > { %v3764_v17 = vadd.f32 %v3763_v10, %v3693_v18  ;;  %v4154_v19 = vpop.f32.mrb[35].mxu1 }
0x1808   : > { %3767 = vst [vmem:[%s249_s10] sm:$0xff] %v3764_v17 }
0x1809 PF: > { %s16_s21 = sadd.s32 1, %s4364_s21  }
0x180a   : > { %p13_p4 = scmp.ge.s32.totalorder %s16_s21, 4  }
0x180c   :  { %15 = sbr.rel (!%p13_p4) target bundleno = 1 (0x1), region = 76 }

</bundles_post_ra>
